<compile_context>
chip_gen: v5e
topology: v5e:2x2
jax: 0.10.0
libtpu: 0.0.40
codegen_flags: <defaults>
</compile_context>

<pallas_src>
import jax
import jax.numpy as jnp
import numpy as np
from jax.experimental import pallas as pl
from jax.experimental.pallas import tpu as pltpu


def _ru(x, m):
    return ((x + m - 1) // m) * m


# ----------------------------------------------------------------------------
# Fused RDB kernel factory
# ----------------------------------------------------------------------------
def _make_rdb_kernel(num_layer, C, G, H, W):
    HW = H * W
    Cp = _ru(C, 8)                 # input channel segment, padded to 8 sublanes
    Gp = _ru(G, 8)                 # growth channel segment, padded to 8 sublanes
    OFF = _ru(W + 1, 128)          # 128-aligned interior lane offset (>= W+1 halo)

    def kernel(*args):
        x_ref = args[0]
        layer_refs = args[1:1 + 2 * num_layer]          # (w3, b3) per dense layer
        w1_ref = args[1 + 2 * num_layer]                 # (C, Cbuf_total)
        b1_ref = args[2 + 2 * num_layer]                 # (C, 1)
        o_ref = args[3 + 2 * num_layer]                  # (1, C, HW)
        feat_ref = args[4 + 2 * num_layer]               # VMEM (Cbuf_total, PBUF)

        # Zero the padded feature buffer (halo rows + padded channels), then
        # drop the input into the interior lanes of channels [0, C).
        feat_ref[...] = jnp.zeros(feat_ref.shape, feat_ref.dtype)
        feat_ref[0:C, pl.ds(OFF, HW)] = x_ref[0].astype(feat_ref.dtype)

        # Lane masks fixing the x-direction wrap of the flattened (y-padded)
        # layout: column 0 must ignore the dx=-1 tap, column W-1 the dx=+1 tap.
        col = jax.lax.broadcasted_iota(jnp.int32, (1, HW), 1) % W
        not_left = col != 0
        not_right = col != (W - 1)

        for l in range(num_layer):
            w_ref = layer_refs[2 * l]                    # (3, Gp, 3*cbuf)
            b_ref = layer_refs[2 * l + 1]                # (Gp, 1)
            cbuf = Cp + l * Gp                           # buffer channels read

            acc = jnp.zeros((Gp, HW), jnp.float32)
            for ky in range(3):
                parts = []
                for kx in range(3):
                    s = OFF + (ky - 1) * W + (kx - 1)    # static shifted window
                    slab = feat_ref[0:cbuf, pl.ds(s, HW)]
                    if kx == 0:
                        slab = jnp.where(not_left, slab, 0.0)
                    elif kx == 2:
                        slab = jnp.where(not_right, slab, 0.0)
                    parts.append(slab)
                patch = jnp.concatenate(parts, axis=0)   # (3*cbuf, HW), aligned
                acc = acc + jnp.dot(w_ref[ky], patch,
                                    preferred_element_type=jnp.float32)
            acc = jnp.maximum(acc + b_ref[...], 0.0)     # bias + ReLU, (Gp, HW)
            # Store this layer's output into its (8-aligned) channel segment.
            feat_ref[cbuf:cbuf + Gp, pl.ds(OFF, HW)] = acc.astype(feat_ref.dtype)

        # Final 1x1 conv over all dense features + bias + residual add.
        y = feat_ref[:, pl.ds(OFF, HW)]                  # (Cbuf_total, HW)
        out = jnp.dot(w1_ref[...], y, preferred_element_type=jnp.float32)
        out = out + b1_ref[...] + x_ref[0].astype(jnp.float32)
        o_ref[0] = out.astype(o_ref.dtype)

    return kernel


# ----------------------------------------------------------------------------
# Weight preparation (layout / channel padding glue, runs in plain JAX)
# ----------------------------------------------------------------------------
def _prep_dense(w_hwio, b, C, G, layer_idx):
    """w_hwio: (3,3,Cin,G) with Cin=C+layer_idx*G -> (3, Gp, 3*Cbuf), (Gp, 1)."""
    Cp, Gp = _ru(C, 8), _ru(G, 8)
    parts = [w_hwio[:, :, :C, :],
             jnp.zeros((3, 3, Cp - C, G), w_hwio.dtype)]
    for k in range(layer_idx):
        parts.append(w_hwio[:, :, C + k * G:C + (k + 1) * G, :])
        parts.append(jnp.zeros((3, 3, Gp - G, G), w_hwio.dtype))
    wb = jnp.concatenate(parts, axis=2)                  # (3, 3, Cbuf, G)
    cbuf = Cp + layer_idx * Gp
    wk = wb.transpose(0, 3, 1, 2).reshape(3, G, 3 * cbuf)   # K order = (kx, cbuf)
    wk = jnp.concatenate(
        [wk, jnp.zeros((3, Gp - G, 3 * cbuf), wk.dtype)], axis=1)
    bk = jnp.concatenate([b, jnp.zeros((Gp - G,), b.dtype)]).reshape(Gp, 1)
    return wk, bk


def _prep_proj(w1, b1, C, G, num_layer):
    """w1: (C_total, C) -> (C, Cbuf_total) with zero rows at padded channels."""
    Cp, Gp = _ru(C, 8), _ru(G, 8)
    parts = [w1[:C], jnp.zeros((Cp - C, C), w1.dtype)]
    for k in range(num_layer):
        parts.append(w1[C + k * G:C + (k + 1) * G])
        parts.append(jnp.zeros((Gp - G, C), w1.dtype))
    wp = jnp.concatenate(parts, axis=0).T                # (C, Cbuf_total)
    return wp, b1.reshape(C, 1)


# ----------------------------------------------------------------------------
# Fused RDB forward (single pallas_call)
# ----------------------------------------------------------------------------
def _rdb_forward_impl(params, x):
    """x: (N, C, H, W) NCHW, matching the PyTorch module layout."""
    N, C, H, W = x.shape
    dense = params["dense"]
    num_layer = len(dense)
    G = dense[0][0].shape[-1]
    Cp, Gp = _ru(C, 8), _ru(G, 8)
    Cbuf_total = Cp + num_layer * Gp
    HW = H * W
    OFF = _ru(W + 1, 128)
    PBUF = 2 * OFF + HW                                  # lane-padded spatial buffer

    flat_inputs = [x.reshape(N, C, HW)]
    in_specs = [pl.BlockSpec((1, C, HW), lambda n: (n, 0, 0))]
    for l, (w, b) in enumerate(dense):
        wk, bk = _prep_dense(w, b, C, G, l)
        flat_inputs += [wk, bk]
        in_specs += [pl.BlockSpec(wk.shape, lambda n: (0, 0, 0)),
                     pl.BlockSpec(bk.shape, lambda n: (0, 0))]
    w1, b1 = params["conv1x1"]
    wp, bp = _prep_proj(w1, b1, C, G, num_layer)
    flat_inputs += [wp, bp]
    in_specs += [pl.BlockSpec(wp.shape, lambda n: (0, 0)),
                 pl.BlockSpec(bp.shape, lambda n: (0, 0))]

    kernel = _make_rdb_kernel(num_layer, C, G, H, W)
    out = pl.pallas_call(
        kernel,
        out_shape=jax.ShapeDtypeStruct((N, C, HW), x.dtype),
        grid=(N,),
        in_specs=in_specs,
        out_specs=pl.BlockSpec((1, C, HW), lambda n: (n, 0, 0)),
        scratch_shapes=[pltpu.VMEM((Cbuf_total, PBUF), jnp.float32)],
        compiler_params=pltpu.CompilerParams(
            dimension_semantics=("parallel",)),
    )(*flat_inputs)
    return out.reshape(N, C, H, W)


rdb_forward = jax.jit(_rdb_forward_impl)


# ----------------------------------------------------------------------------
# Parameters (deterministic, built in-script) and pure-JAX reference
# ----------------------------------------------------------------------------
def init_rdb_params(key, in_channels, growth_rate, num_layer):
    params = {"dense": [], "conv1x1": None}
    cin = in_channels
    for _ in range(num_layer):
        key, kw, kb = jax.random.split(key, 3)
        w = 0.1 * jax.random.normal(kw, (3, 3, cin, growth_rate), jnp.float32)
        b = 0.1 * jax.random.normal(kb, (growth_rate,), jnp.float32)
        params["dense"].append((w, b))
        cin += growth_rate
    key, kw, kb = jax.random.split(key, 3)
    w1 = 0.1 * jax.random.normal(kw, (cin, in_channels), jnp.float32)
    b1 = 0.1 * jax.random.normal(kb, (in_channels,), jnp.float32)
    params["conv1x1"] = (w1, b1)
    return params


def _ref_conv(x, w_hwio, b, padding):
    # x NCHW, w (kh, kw, Cin, Cout)
    y = jax.lax.conv_general_dilated(
        x, w_hwio, window_strides=(1, 1), padding=padding,
        dimension_numbers=("NCHW", "HWIO", "NCHW"))
    return y + b.reshape(1, -1, 1, 1)


def rdb_reference(params, x):
    out = x
    for (w, b) in params["dense"]:
        feat = jnp.maximum(_ref_conv(out, w, b, "SAME"), 0.0)
        out = jnp.concatenate([out, feat], axis=1)
    w1, b1 = params["conv1x1"]
    y = _ref_conv(out, w1.reshape(1, 1, *w1.shape), b1, "VALID")
    return y + x


if __name__ == "__main__":
    key = jax.random.PRNGKey(0)
    N, C, H, W = 2, 4, 16, 16
    growth_rate, num_layer = 4, 3

    kx_, kp = jax.random.split(key)
    # Same layout as the PyTorch module: NCHW (2, 4, 16, 16).
    x = jax.random.normal(kx_, (N, C, H, W), jnp.float32)
    params = init_rdb_params(kp, C, growth_rate, num_layer)

    out = jax.block_until_ready(rdb_forward(params, x))
    ref = jax.block_until_ready(rdb_reference(params, x))

    assert out.shape == (N, C, H, W), out.shape
    np.testing.assert_allclose(np.asarray(out), np.asarray(ref),
                               rtol=2e-2, atol=2e-2)
    print("KERNEL_OK")
</pallas_src>

<mosaic_0001>
module attributes {stable_mosaic.version = 11 : i64} {
  func.func @kernel(%arg0: i32, %arg1: memref<1x4x256xf32, #tpu.memory_space<vmem>>, %arg2: memref<3x8x24xf32, #tpu.memory_space<vmem>>, %arg3: memref<8x1xf32, #tpu.memory_space<vmem>>, %arg4: memref<3x8x48xf32, #tpu.memory_space<vmem>>, %arg5: memref<8x1xf32, #tpu.memory_space<vmem>>, %arg6: memref<3x8x72xf32, #tpu.memory_space<vmem>>, %arg7: memref<8x1xf32, #tpu.memory_space<vmem>>, %arg8: memref<4x32xf32, #tpu.memory_space<vmem>>, %arg9: memref<4x1xf32, #tpu.memory_space<vmem>>, %arg10: memref<1x4x256xf32, #tpu.memory_space<vmem>>, %arg11: memref<32x512xf32, #tpu.memory_space<vmem>>) attributes {dimension_semantics = [#tpu.dimension_semantics<parallel>], iteration_bounds = array<i64: 2>, scalar_prefetch = 0 : i64, scratch_operands = 1 : i64, tpu.core_type = #tpu.core_type<tc>, window_params = [{transform_indices = @transform_0, window_bounds = array<i64: 1, 4, 256>}, {pipeline_mode = #tpu.pipeline_mode<synchronous>, transform_indices = @transform_1, window_bounds = array<i64: 3, 8, 24>}, {pipeline_mode = #tpu.pipeline_mode<synchronous>, transform_indices = @transform_2, window_bounds = array<i64: 8, 1>}, {pipeline_mode = #tpu.pipeline_mode<synchronous>, transform_indices = @transform_3, window_bounds = array<i64: 3, 8, 48>}, {pipeline_mode = #tpu.pipeline_mode<synchronous>, transform_indices = @transform_4, window_bounds = array<i64: 8, 1>}, {pipeline_mode = #tpu.pipeline_mode<synchronous>, transform_indices = @transform_5, window_bounds = array<i64: 3, 8, 72>}, {pipeline_mode = #tpu.pipeline_mode<synchronous>, transform_indices = @transform_6, window_bounds = array<i64: 8, 1>}, {pipeline_mode = #tpu.pipeline_mode<synchronous>, transform_indices = @transform_7, window_bounds = array<i64: 4, 32>}, {pipeline_mode = #tpu.pipeline_mode<synchronous>, transform_indices = @transform_8, window_bounds = array<i64: 4, 1>}, {transform_indices = @transform_9, window_bounds = array<i64: 1, 4, 256>}]} {
    %cst = arith.constant 0.000000e+00 : f32
    %0 = vector.broadcast %cst : f32 to vector<32x512xf32>
    %c0 = arith.constant 0 : index
    %c0_0 = arith.constant 0 : index
    %1 = vector.load %arg11[%c0, %c0_0] : memref<32x512xf32, #tpu.memory_space<vmem>>, vector<32x512xf32>
    tpu.vector_store %arg11[%c0, %c0_0], %0 {strides = array<i32>} : memref<32x512xf32, #tpu.memory_space<vmem>>, vector<32x512xf32>,
    %c0_1 = arith.constant 0 : index
    %c0_2 = arith.constant 0 : index
    %c0_3 = arith.constant 0 : index
    %2 = vector.load %arg1[%c0_1, %c0_2, %c0_3] : memref<1x4x256xf32, #tpu.memory_space<vmem>>, vector<1x4x256xf32>
    %3 = vector.shape_cast %2 : vector<1x4x256xf32> to vector<4x256xf32>
    %c0_4 = arith.constant 0 : index
    %c128 = arith.constant 128 : index
    %4 = vector.load %arg11[%c0_4, %c128] : memref<32x512xf32, #tpu.memory_space<vmem>>, vector<4x256xf32>
    tpu.vector_store %arg11[%c0_4, %c128], %3 {strides = array<i32>} : memref<32x512xf32, #tpu.memory_space<vmem>>, vector<4x256xf32>,
    %5 = tpu.iota {dimensions = array<i32: 1>} : vector<1x256xi32>
    %c16_i32 = arith.constant 16 : i32
    %c0_i32 = arith.constant 0 : i32
    %6 = arith.cmpi eq, %c16_i32, %c0_i32 : i32
    %c1_i32 = arith.constant 1 : i32
    %7 = arith.select %6, %c1_i32, %c16_i32 : i32
    %8 = vector.broadcast %7 : i32 to vector<1x256xi32>
    %9 = arith.remsi %5, %8 : vector<1x256xi32>
    %c0_i32_5 = arith.constant 0 : i32
    %10 = vector.broadcast %c0_i32_5 : i32 to vector<1x256xi32>
    %11 = arith.cmpi ne, %9, %10 : vector<1x256xi32>
    %c0_i32_6 = arith.constant 0 : i32
    %12 = vector.broadcast %c0_i32_6 : i32 to vector<1x256xi32>
    %13 = arith.cmpi slt, %9, %12 : vector<1x256xi32>
    %c0_i32_7 = arith.constant 0 : i32
    %14 = arith.cmpi slt, %7, %c0_i32_7 : i32
    %15 = vector.broadcast %14 : i1 to vector<1x256xi1>
    %16 = vector.broadcast %15 : vector<1x256xi1> to vector<1x256xi1>
    %17 = arith.xori %13, %16 : vector<1x256xi1>
    %18 = arith.andi %17, %11 : vector<1x256xi1>
    %19 = vector.broadcast %7 : i32 to vector<1x256xi32>
    %20 = arith.addi %9, %19 : vector<1x256xi32>
    %21 = arith.select %18, %20, %9 : vector<1x256xi1>, vector<1x256xi32>
    %c0_i32_8 = arith.constant 0 : i32
    %22 = vector.broadcast %c0_i32_8 : i32 to vector<1x256xi32>
    %23 = arith.cmpi ne, %21, %22 : vector<1x256xi32>
    %c15_i32 = arith.constant 15 : i32
    %24 = vector.broadcast %c15_i32 : i32 to vector<1x256xi32>
    %25 = arith.cmpi ne, %21, %24 : vector<1x256xi32>
    %cst_9 = arith.constant 0.000000e+00 : f32
    %26 = vector.broadcast %cst_9 : f32 to vector<8x256xf32>
    %c0_10 = arith.constant 0 : index
    %c111 = arith.constant 111 : index
    %27 = vector.load %arg11[%c0_10, %c111] : memref<32x512xf32, #tpu.memory_space<vmem>>, vector<8x256xf32>
    %cst_11 = arith.constant 0.000000e+00 : f32
    %28 = vector.shape_cast %23 : vector<1x256xi1> to vector<1x256xi1>
    %29 = vector.broadcast %28 : vector<1x256xi1> to vector<8x256xi1>
    %30 = vector.broadcast %cst_11 : f32 to vector<8x256xf32>
    %31 = arith.select %29, %27, %30 : vector<8x256xi1>, vector<8x256xf32>
    %c0_12 = arith.constant 0 : index
    %c112 = arith.constant 112 : index
    %32 = vector.load %arg11[%c0_12, %c112] : memref<32x512xf32, #tpu.memory_space<vmem>>, vector<8x256xf32>
    %c0_13 = arith.constant 0 : index
    %c113 = arith.constant 113 : index
    %33 = vector.load %arg11[%c0_13, %c113] : memref<32x512xf32, #tpu.memory_space<vmem>>, vector<8x256xf32>
    %cst_14 = arith.constant 0.000000e+00 : f32
    %34 = vector.shape_cast %25 : vector<1x256xi1> to vector<1x256xi1>
    %35 = vector.broadcast %34 : vector<1x256xi1> to vector<8x256xi1>
    %36 = vector.broadcast %cst_14 : f32 to vector<8x256xf32>
    %37 = arith.select %35, %33, %36 : vector<8x256xi1>, vector<8x256xf32>
    %38 = tpu.concatenate %31, %32, %37 in 0 : vector<8x256xf32>, vector<8x256xf32>, vector<8x256xf32> -> vector<24x256xf32>
    %c0_15 = arith.constant 0 : index
    %c0_16 = arith.constant 0 : index
    %c0_17 = arith.constant 0 : index
    %39 = vector.load %arg2[%c0_15, %c0_16, %c0_17] : memref<3x8x24xf32, #tpu.memory_space<vmem>>, vector<1x8x24xf32>
    %40 = vector.shape_cast %39 : vector<1x8x24xf32> to vector<8x24xf32>
    %cst_18 = arith.constant dense<0.000000e+00> : vector<8x256xf32>
    %41 = tpu.matmul %40, %38, %cst_18 {dimension_numbers = #tpu.dot_dimension_numbers<[1], [0], [0], [1], [0, 0, 1, 1], [], []>} : vector<8x24xf32>, vector<24x256xf32>, vector<8x256xf32> -> vector<8x256xf32>
    %42 = arith.addf %26, %41 : vector<8x256xf32>
    %c0_19 = arith.constant 0 : index
    %c127 = arith.constant 127 : index
    %43 = vector.load %arg11[%c0_19, %c127] : memref<32x512xf32, #tpu.memory_space<vmem>>, vector<8x256xf32>
    %cst_20 = arith.constant 0.000000e+00 : f32
    %44 = vector.shape_cast %23 : vector<1x256xi1> to vector<1x256xi1>
    %45 = vector.broadcast %44 : vector<1x256xi1> to vector<8x256xi1>
    %46 = vector.broadcast %cst_20 : f32 to vector<8x256xf32>
    %47 = arith.select %45, %43, %46 : vector<8x256xi1>, vector<8x256xf32>
    %c0_21 = arith.constant 0 : index
    %c128_22 = arith.constant 128 : index
    %48 = vector.load %arg11[%c0_21, %c128_22] : memref<32x512xf32, #tpu.memory_space<vmem>>, vector<8x256xf32>
    %c0_23 = arith.constant 0 : index
    %c129 = arith.constant 129 : index
    %49 = vector.load %arg11[%c0_23, %c129] : memref<32x512xf32, #tpu.memory_space<vmem>>, vector<8x256xf32>
    %cst_24 = arith.constant 0.000000e+00 : f32
    %50 = vector.shape_cast %25 : vector<1x256xi1> to vector<1x256xi1>
    %51 = vector.broadcast %50 : vector<1x256xi1> to vector<8x256xi1>
    %52 = vector.broadcast %cst_24 : f32 to vector<8x256xf32>
    %53 = arith.select %51, %49, %52 : vector<8x256xi1>, vector<8x256xf32>
    %54 = tpu.concatenate %47, %48, %53 in 0 : vector<8x256xf32>, vector<8x256xf32>, vector<8x256xf32> -> vector<24x256xf32>
    %c1 = arith.constant 1 : index
    %c0_25 = arith.constant 0 : index
    %c0_26 = arith.constant 0 : index
    %55 = vector.load %arg2[%c1, %c0_25, %c0_26] : memref<3x8x24xf32, #tpu.memory_space<vmem>>, vector<1x8x24xf32>
    %56 = vector.shape_cast %55 : vector<1x8x24xf32> to vector<8x24xf32>
    %cst_27 = arith.constant dense<0.000000e+00> : vector<8x256xf32>
    %57 = tpu.matmul %56, %54, %cst_27 {dimension_numbers = #tpu.dot_dimension_numbers<[1], [0], [0], [1], [0, 0, 1, 1], [], []>} : vector<8x24xf32>, vector<24x256xf32>, vector<8x256xf32> -> vector<8x256xf32>
    %58 = arith.addf %42, %57 : vector<8x256xf32>
    %c0_28 = arith.constant 0 : index
    %c143 = arith.constant 143 : index
    %59 = vector.load %arg11[%c0_28, %c143] : memref<32x512xf32, #tpu.memory_space<vmem>>, vector<8x256xf32>
    %cst_29 = arith.constant 0.000000e+00 : f32
    %60 = vector.shape_cast %23 : vector<1x256xi1> to vector<1x256xi1>
    %61 = vector.broadcast %60 : vector<1x256xi1> to vector<8x256xi1>
    %62 = vector.broadcast %cst_29 : f32 to vector<8x256xf32>
    %63 = arith.select %61, %59, %62 : vector<8x256xi1>, vector<8x256xf32>
    %c0_30 = arith.constant 0 : index
    %c144 = arith.constant 144 : index
    %64 = vector.load %arg11[%c0_30, %c144] : memref<32x512xf32, #tpu.memory_space<vmem>>, vector<8x256xf32>
    %c0_31 = arith.constant 0 : index
    %c145 = arith.constant 145 : index
    %65 = vector.load %arg11[%c0_31, %c145] : memref<32x512xf32, #tpu.memory_space<vmem>>, vector<8x256xf32>
    %cst_32 = arith.constant 0.000000e+00 : f32
    %66 = vector.shape_cast %25 : vector<1x256xi1> to vector<1x256xi1>
    %67 = vector.broadcast %66 : vector<1x256xi1> to vector<8x256xi1>
    %68 = vector.broadcast %cst_32 : f32 to vector<8x256xf32>
    %69 = arith.select %67, %65, %68 : vector<8x256xi1>, vector<8x256xf32>
    %70 = tpu.concatenate %63, %64, %69 in 0 : vector<8x256xf32>, vector<8x256xf32>, vector<8x256xf32> -> vector<24x256xf32>
    %c2 = arith.constant 2 : index
    %c0_33 = arith.constant 0 : index
    %c0_34 = arith.constant 0 : index
    %71 = vector.load %arg2[%c2, %c0_33, %c0_34] : memref<3x8x24xf32, #tpu.memory_space<vmem>>, vector<1x8x24xf32>
    %72 = vector.shape_cast %71 : vector<1x8x24xf32> to vector<8x24xf32>
    %cst_35 = arith.constant dense<0.000000e+00> : vector<8x256xf32>
    %73 = tpu.matmul %72, %70, %cst_35 {dimension_numbers = #tpu.dot_dimension_numbers<[1], [0], [0], [1], [0, 0, 1, 1], [], []>} : vector<8x24xf32>, vector<24x256xf32>, vector<8x256xf32> -> vector<8x256xf32>
    %74 = arith.addf %58, %73 : vector<8x256xf32>
    %c0_36 = arith.constant 0 : index
    %c0_37 = arith.constant 0 : index
    %75 = vector.load %arg3[%c0_36, %c0_37] : memref<8x1xf32, #tpu.memory_space<vmem>>, vector<8x1xf32>
    %76 = vector.broadcast %75 : vector<8x1xf32> to vector<8x256xf32>
    %77 = arith.addf %74, %76 : vector<8x256xf32>
    %cst_38 = arith.constant 0.000000e+00 : f32
    %78 = vector.broadcast %cst_38 : f32 to vector<8x256xf32>
    %79 = arith.maximumf %77, %78 : vector<8x256xf32>
    %c8 = arith.constant 8 : index
    %c128_39 = arith.constant 128 : index
    %80 = vector.load %arg11[%c8, %c128_39] : memref<32x512xf32, #tpu.memory_space<vmem>>, vector<8x256xf32>
    tpu.vector_store %arg11[%c8, %c128_39], %79 {strides = array<i32>} : memref<32x512xf32, #tpu.memory_space<vmem>>, vector<8x256xf32>,
    %cst_40 = arith.constant 0.000000e+00 : f32
    %81 = vector.broadcast %cst_40 : f32 to vector<8x256xf32>
    %c0_41 = arith.constant 0 : index
    %c111_42 = arith.constant 111 : index
    %82 = vector.load %arg11[%c0_41, %c111_42] : memref<32x512xf32, #tpu.memory_space<vmem>>, vector<16x256xf32>
    %cst_43 = arith.constant 0.000000e+00 : f32
    %83 = vector.shape_cast %23 : vector<1x256xi1> to vector<1x256xi1>
    %84 = vector.broadcast %83 : vector<1x256xi1> to vector<16x256xi1>
    %85 = vector.broadcast %cst_43 : f32 to vector<16x256xf32>
    %86 = arith.select %84, %82, %85 : vector<16x256xi1>, vector<16x256xf32>
    %c0_44 = arith.constant 0 : index
    %c112_45 = arith.constant 112 : index
    %87 = vector.load %arg11[%c0_44, %c112_45] : memref<32x512xf32, #tpu.memory_space<vmem>>, vector<16x256xf32>
    %c0_46 = arith.constant 0 : index
    %c113_47 = arith.constant 113 : index
    %88 = vector.load %arg11[%c0_46, %c113_47] : memref<32x512xf32, #tpu.memory_space<vmem>>, vector<16x256xf32>
    %cst_48 = arith.constant 0.000000e+00 : f32
    %89 = vector.shape_cast %25 : vector<1x256xi1> to vector<1x256xi1>
    %90 = vector.broadcast %89 : vector<1x256xi1> to vector<16x256xi1>
    %91 = vector.broadcast %cst_48 : f32 to vector<16x256xf32>
    %92 = arith.select %90, %88, %91 : vector<16x256xi1>, vector<16x256xf32>
    %93 = tpu.concatenate %86, %87, %92 in 0 : vector<16x256xf32>, vector<16x256xf32>, vector<16x256xf32> -> vector<48x256xf32>
    %c0_49 = arith.constant 0 : index
    %c0_50 = arith.constant 0 : index
    %c0_51 = arith.constant 0 : index
    %94 = vector.load %arg4[%c0_49, %c0_50, %c0_51] : memref<3x8x48xf32, #tpu.memory_space<vmem>>, vector<1x8x48xf32>
    %95 = vector.shape_cast %94 : vector<1x8x48xf32> to vector<8x48xf32>
    %cst_52 = arith.constant dense<0.000000e+00> : vector<8x256xf32>
    %96 = tpu.matmul %95, %93, %cst_52 {dimension_numbers = #tpu.dot_dimension_numbers<[1], [0], [0], [1], [0, 0, 1, 1], [], []>} : vector<8x48xf32>, vector<48x256xf32>, vector<8x256xf32> -> vector<8x256xf32>
    %97 = arith.addf %81, %96 : vector<8x256xf32>
    %c0_53 = arith.constant 0 : index
    %c127_54 = arith.constant 127 : index
    %98 = vector.load %arg11[%c0_53, %c127_54] : memref<32x512xf32, #tpu.memory_space<vmem>>, vector<16x256xf32>
    %cst_55 = arith.constant 0.000000e+00 : f32
    %99 = vector.shape_cast %23 : vector<1x256xi1> to vector<1x256xi1>
    %100 = vector.broadcast %99 : vector<1x256xi1> to vector<16x256xi1>
    %101 = vector.broadcast %cst_55 : f32 to vector<16x256xf32>
    %102 = arith.select %100, %98, %101 : vector<16x256xi1>, vector<16x256xf32>
    %c0_56 = arith.constant 0 : index
    %c128_57 = arith.constant 128 : index
    %103 = vector.load %arg11[%c0_56, %c128_57] : memref<32x512xf32, #tpu.memory_space<vmem>>, vector<16x256xf32>
    %c0_58 = arith.constant 0 : index
    %c129_59 = arith.constant 129 : index
    %104 = vector.load %arg11[%c0_58, %c129_59] : memref<32x512xf32, #tpu.memory_space<vmem>>, vector<16x256xf32>
    %cst_60 = arith.constant 0.000000e+00 : f32
    %105 = vector.shape_cast %25 : vector<1x256xi1> to vector<1x256xi1>
    %106 = vector.broadcast %105 : vector<1x256xi1> to vector<16x256xi1>
    %107 = vector.broadcast %cst_60 : f32 to vector<16x256xf32>
    %108 = arith.select %106, %104, %107 : vector<16x256xi1>, vector<16x256xf32>
    %109 = tpu.concatenate %102, %103, %108 in 0 : vector<16x256xf32>, vector<16x256xf32>, vector<16x256xf32> -> vector<48x256xf32>
    %c1_61 = arith.constant 1 : index
    %c0_62 = arith.constant 0 : index
    %c0_63 = arith.constant 0 : index
    %110 = vector.load %arg4[%c1_61, %c0_62, %c0_63] : memref<3x8x48xf32, #tpu.memory_space<vmem>>, vector<1x8x48xf32>
    %111 = vector.shape_cast %110 : vector<1x8x48xf32> to vector<8x48xf32>
    %cst_64 = arith.constant dense<0.000000e+00> : vector<8x256xf32>
    %112 = tpu.matmul %111, %109, %cst_64 {dimension_numbers = #tpu.dot_dimension_numbers<[1], [0], [0], [1], [0, 0, 1, 1], [], []>} : vector<8x48xf32>, vector<48x256xf32>, vector<8x256xf32> -> vector<8x256xf32>
    %113 = arith.addf %97, %112 : vector<8x256xf32>
    %c0_65 = arith.constant 0 : index
    %c143_66 = arith.constant 143 : index
    %114 = vector.load %arg11[%c0_65, %c143_66] : memref<32x512xf32, #tpu.memory_space<vmem>>, vector<16x256xf32>
    %cst_67 = arith.constant 0.000000e+00 : f32
    %115 = vector.shape_cast %23 : vector<1x256xi1> to vector<1x256xi1>
    %116 = vector.broadcast %115 : vector<1x256xi1> to vector<16x256xi1>
    %117 = vector.broadcast %cst_67 : f32 to vector<16x256xf32>
    %118 = arith.select %116, %114, %117 : vector<16x256xi1>, vector<16x256xf32>
    %c0_68 = arith.constant 0 : index
    %c144_69 = arith.constant 144 : index
    %119 = vector.load %arg11[%c0_68, %c144_69] : memref<32x512xf32, #tpu.memory_space<vmem>>, vector<16x256xf32>
    %c0_70 = arith.constant 0 : index
    %c145_71 = arith.constant 145 : index
    %120 = vector.load %arg11[%c0_70, %c145_71] : memref<32x512xf32, #tpu.memory_space<vmem>>, vector<16x256xf32>
    %cst_72 = arith.constant 0.000000e+00 : f32
    %121 = vector.shape_cast %25 : vector<1x256xi1> to vector<1x256xi1>
    %122 = vector.broadcast %121 : vector<1x256xi1> to vector<16x256xi1>
    %123 = vector.broadcast %cst_72 : f32 to vector<16x256xf32>
    %124 = arith.select %122, %120, %123 : vector<16x256xi1>, vector<16x256xf32>
    %125 = tpu.concatenate %118, %119, %124 in 0 : vector<16x256xf32>, vector<16x256xf32>, vector<16x256xf32> -> vector<48x256xf32>
    %c2_73 = arith.constant 2 : index
    %c0_74 = arith.constant 0 : index
    %c0_75 = arith.constant 0 : index
    %126 = vector.load %arg4[%c2_73, %c0_74, %c0_75] : memref<3x8x48xf32, #tpu.memory_space<vmem>>, vector<1x8x48xf32>
    %127 = vector.shape_cast %126 : vector<1x8x48xf32> to vector<8x48xf32>
    %cst_76 = arith.constant dense<0.000000e+00> : vector<8x256xf32>
    %128 = tpu.matmul %127, %125, %cst_76 {dimension_numbers = #tpu.dot_dimension_numbers<[1], [0], [0], [1], [0, 0, 1, 1], [], []>} : vector<8x48xf32>, vector<48x256xf32>, vector<8x256xf32> -> vector<8x256xf32>
    %129 = arith.addf %113, %128 : vector<8x256xf32>
    %c0_77 = arith.constant 0 : index
    %c0_78 = arith.constant 0 : index
    %130 = vector.load %arg5[%c0_77, %c0_78] : memref<8x1xf32, #tpu.memory_space<vmem>>, vector<8x1xf32>
    %131 = vector.broadcast %130 : vector<8x1xf32> to vector<8x256xf32>
    %132 = arith.addf %129, %131 : vector<8x256xf32>
    %cst_79 = arith.constant 0.000000e+00 : f32
    %133 = vector.broadcast %cst_79 : f32 to vector<8x256xf32>
    %134 = arith.maximumf %132, %133 : vector<8x256xf32>
    %c16 = arith.constant 16 : index
    %c128_80 = arith.constant 128 : index
    %135 = vector.load %arg11[%c16, %c128_80] : memref<32x512xf32, #tpu.memory_space<vmem>>, vector<8x256xf32>
    tpu.vector_store %arg11[%c16, %c128_80], %134 {strides = array<i32>} : memref<32x512xf32, #tpu.memory_space<vmem>>, vector<8x256xf32>,
    %cst_81 = arith.constant 0.000000e+00 : f32
    %136 = vector.broadcast %cst_81 : f32 to vector<8x256xf32>
    %c0_82 = arith.constant 0 : index
    %c111_83 = arith.constant 111 : index
    %137 = vector.load %arg11[%c0_82, %c111_83] : memref<32x512xf32, #tpu.memory_space<vmem>>, vector<24x256xf32>
    %cst_84 = arith.constant 0.000000e+00 : f32
    %138 = vector.shape_cast %23 : vector<1x256xi1> to vector<1x256xi1>
    %139 = vector.broadcast %138 : vector<1x256xi1> to vector<24x256xi1>
    %140 = vector.broadcast %cst_84 : f32 to vector<24x256xf32>
    %141 = arith.select %139, %137, %140 : vector<24x256xi1>, vector<24x256xf32>
    %c0_85 = arith.constant 0 : index
    %c112_86 = arith.constant 112 : index
    %142 = vector.load %arg11[%c0_85, %c112_86] : memref<32x512xf32, #tpu.memory_space<vmem>>, vector<24x256xf32>
    %c0_87 = arith.constant 0 : index
    %c113_88 = arith.constant 113 : index
    %143 = vector.load %arg11[%c0_87, %c113_88] : memref<32x512xf32, #tpu.memory_space<vmem>>, vector<24x256xf32>
    %cst_89 = arith.constant 0.000000e+00 : f32
    %144 = vector.shape_cast %25 : vector<1x256xi1> to vector<1x256xi1>
    %145 = vector.broadcast %144 : vector<1x256xi1> to vector<24x256xi1>
    %146 = vector.broadcast %cst_89 : f32 to vector<24x256xf32>
    %147 = arith.select %145, %143, %146 : vector<24x256xi1>, vector<24x256xf32>
    %148 = tpu.concatenate %141, %142, %147 in 0 : vector<24x256xf32>, vector<24x256xf32>, vector<24x256xf32> -> vector<72x256xf32>
    %c0_90 = arith.constant 0 : index
    %c0_91 = arith.constant 0 : index
    %c0_92 = arith.constant 0 : index
    %149 = vector.load %arg6[%c0_90, %c0_91, %c0_92] : memref<3x8x72xf32, #tpu.memory_space<vmem>>, vector<1x8x72xf32>
    %150 = vector.shape_cast %149 : vector<1x8x72xf32> to vector<8x72xf32>
    %cst_93 = arith.constant dense<0.000000e+00> : vector<8x256xf32>
    %151 = tpu.matmul %150, %148, %cst_93 {dimension_numbers = #tpu.dot_dimension_numbers<[1], [0], [0], [1], [0, 0, 1, 1], [], []>} : vector<8x72xf32>, vector<72x256xf32>, vector<8x256xf32> -> vector<8x256xf32>
    %152 = arith.addf %136, %151 : vector<8x256xf32>
    %c0_94 = arith.constant 0 : index
    %c127_95 = arith.constant 127 : index
    %153 = vector.load %arg11[%c0_94, %c127_95] : memref<32x512xf32, #tpu.memory_space<vmem>>, vector<24x256xf32>
    %cst_96 = arith.constant 0.000000e+00 : f32
    %154 = vector.shape_cast %23 : vector<1x256xi1> to vector<1x256xi1>
    %155 = vector.broadcast %154 : vector<1x256xi1> to vector<24x256xi1>
    %156 = vector.broadcast %cst_96 : f32 to vector<24x256xf32>
    %157 = arith.select %155, %153, %156 : vector<24x256xi1>, vector<24x256xf32>
    %c0_97 = arith.constant 0 : index
    %c128_98 = arith.constant 128 : index
    %158 = vector.load %arg11[%c0_97, %c128_98] : memref<32x512xf32, #tpu.memory_space<vmem>>, vector<24x256xf32>
    %c0_99 = arith.constant 0 : index
    %c129_100 = arith.constant 129 : index
    %159 = vector.load %arg11[%c0_99, %c129_100] : memref<32x512xf32, #tpu.memory_space<vmem>>, vector<24x256xf32>
    %cst_101 = arith.constant 0.000000e+00 : f32
    %160 = vector.shape_cast %25 : vector<1x256xi1> to vector<1x256xi1>
    %161 = vector.broadcast %160 : vector<1x256xi1> to vector<24x256xi1>
    %162 = vector.broadcast %cst_101 : f32 to vector<24x256xf32>
    %163 = arith.select %161, %159, %162 : vector<24x256xi1>, vector<24x256xf32>
    %164 = tpu.concatenate %157, %158, %163 in 0 : vector<24x256xf32>, vector<24x256xf32>, vector<24x256xf32> -> vector<72x256xf32>
    %c1_102 = arith.constant 1 : index
    %c0_103 = arith.constant 0 : index
    %c0_104 = arith.constant 0 : index
    %165 = vector.load %arg6[%c1_102, %c0_103, %c0_104] : memref<3x8x72xf32, #tpu.memory_space<vmem>>, vector<1x8x72xf32>
    %166 = vector.shape_cast %165 : vector<1x8x72xf32> to vector<8x72xf32>
    %cst_105 = arith.constant dense<0.000000e+00> : vector<8x256xf32>
    %167 = tpu.matmul %166, %164, %cst_105 {dimension_numbers = #tpu.dot_dimension_numbers<[1], [0], [0], [1], [0, 0, 1, 1], [], []>} : vector<8x72xf32>, vector<72x256xf32>, vector<8x256xf32> -> vector<8x256xf32>
    %168 = arith.addf %152, %167 : vector<8x256xf32>
    %c0_106 = arith.constant 0 : index
    %c143_107 = arith.constant 143 : index
    %169 = vector.load %arg11[%c0_106, %c143_107] : memref<32x512xf32, #tpu.memory_space<vmem>>, vector<24x256xf32>
    %cst_108 = arith.constant 0.000000e+00 : f32
    %170 = vector.shape_cast %23 : vector<1x256xi1> to vector<1x256xi1>
    %171 = vector.broadcast %170 : vector<1x256xi1> to vector<24x256xi1>
    %172 = vector.broadcast %cst_108 : f32 to vector<24x256xf32>
    %173 = arith.select %171, %169, %172 : vector<24x256xi1>, vector<24x256xf32>
    %c0_109 = arith.constant 0 : index
    %c144_110 = arith.constant 144 : index
    %174 = vector.load %arg11[%c0_109, %c144_110] : memref<32x512xf32, #tpu.memory_space<vmem>>, vector<24x256xf32>
    %c0_111 = arith.constant 0 : index
    %c145_112 = arith.constant 145 : index
    %175 = vector.load %arg11[%c0_111, %c145_112] : memref<32x512xf32, #tpu.memory_space<vmem>>, vector<24x256xf32>
    %cst_113 = arith.constant 0.000000e+00 : f32
    %176 = vector.shape_cast %25 : vector<1x256xi1> to vector<1x256xi1>
    %177 = vector.broadcast %176 : vector<1x256xi1> to vector<24x256xi1>
    %178 = vector.broadcast %cst_113 : f32 to vector<24x256xf32>
    %179 = arith.select %177, %175, %178 : vector<24x256xi1>, vector<24x256xf32>
    %180 = tpu.concatenate %173, %174, %179 in 0 : vector<24x256xf32>, vector<24x256xf32>, vector<24x256xf32> -> vector<72x256xf32>
    %c2_114 = arith.constant 2 : index
    %c0_115 = arith.constant 0 : index
    %c0_116 = arith.constant 0 : index
    %181 = vector.load %arg6[%c2_114, %c0_115, %c0_116] : memref<3x8x72xf32, #tpu.memory_space<vmem>>, vector<1x8x72xf32>
    %182 = vector.shape_cast %181 : vector<1x8x72xf32> to vector<8x72xf32>
    %cst_117 = arith.constant dense<0.000000e+00> : vector<8x256xf32>
    %183 = tpu.matmul %182, %180, %cst_117 {dimension_numbers = #tpu.dot_dimension_numbers<[1], [0], [0], [1], [0, 0, 1, 1], [], []>} : vector<8x72xf32>, vector<72x256xf32>, vector<8x256xf32> -> vector<8x256xf32>
    %184 = arith.addf %168, %183 : vector<8x256xf32>
    %c0_118 = arith.constant 0 : index
    %c0_119 = arith.constant 0 : index
    %185 = vector.load %arg7[%c0_118, %c0_119] : memref<8x1xf32, #tpu.memory_space<vmem>>, vector<8x1xf32>
    %186 = vector.broadcast %185 : vector<8x1xf32> to vector<8x256xf32>
    %187 = arith.addf %184, %186 : vector<8x256xf32>
    %cst_120 = arith.constant 0.000000e+00 : f32
    %188 = vector.broadcast %cst_120 : f32 to vector<8x256xf32>
    %189 = arith.maximumf %187, %188 : vector<8x256xf32>
    %c24 = arith.constant 24 : index
    %c128_121 = arith.constant 128 : index
    %190 = vector.load %arg11[%c24, %c128_121] : memref<32x512xf32, #tpu.memory_space<vmem>>, vector<8x256xf32>
    tpu.vector_store %arg11[%c24, %c128_121], %189 {strides = array<i32>} : memref<32x512xf32, #tpu.memory_space<vmem>>, vector<8x256xf32>,
    %c0_122 = arith.constant 0 : index
    %c128_123 = arith.constant 128 : index
    %191 = vector.load %arg11[%c0_122, %c128_123] : memref<32x512xf32, #tpu.memory_space<vmem>>, vector<32x256xf32>
    %c0_124 = arith.constant 0 : index
    %c0_125 = arith.constant 0 : index
    %192 = vector.load %arg8[%c0_124, %c0_125] : memref<4x32xf32, #tpu.memory_space<vmem>>, vector<4x32xf32>
    %cst_126 = arith.constant dense<0.000000e+00> : vector<4x256xf32>
    %193 = tpu.matmul %192, %191, %cst_126 {dimension_numbers = #tpu.dot_dimension_numbers<[1], [0], [0], [1], [0, 0, 1, 1], [], []>} : vector<4x32xf32>, vector<32x256xf32>, vector<4x256xf32> -> vector<4x256xf32>
    %c0_127 = arith.constant 0 : index
    %c0_128 = arith.constant 0 : index
    %194 = vector.load %arg9[%c0_127, %c0_128] : memref<4x1xf32, #tpu.memory_space<vmem>>, vector<4x1xf32>
    %195 = vector.broadcast %194 : vector<4x1xf32> to vector<4x256xf32>
    %196 = arith.addf %193, %195 : vector<4x256xf32>
    %c0_129 = arith.constant 0 : index
    %c0_130 = arith.constant 0 : index
    %c0_131 = arith.constant 0 : index
    %197 = vector.load %arg1[%c0_129, %c0_130, %c0_131] : memref<1x4x256xf32, #tpu.memory_space<vmem>>, vector<1x4x256xf32>
    %198 = vector.shape_cast %197 : vector<1x4x256xf32> to vector<4x256xf32>
    %199 = arith.addf %196, %198 : vector<4x256xf32>
    %c0_132 = arith.constant 0 : index
    %c0_133 = arith.constant 0 : index
    %c0_134 = arith.constant 0 : index
    %200 = vector.load %arg10[%c0_132, %c0_133, %c0_134] : memref<1x4x256xf32, #tpu.memory_space<vmem>>, vector<1x4x256xf32>
    %201 = vector.shape_cast %200 : vector<1x4x256xf32> to vector<4x256xf32>
    %202 = vector.shape_cast %199 : vector<4x256xf32> to vector<1x4x256xf32>
    tpu.vector_store %arg10[%c0_132, %c0_133, %c0_134], %202 {strides = array<i32>} : memref<1x4x256xf32, #tpu.memory_space<vmem>>, vector<1x4x256xf32>,
    return
  }
  func.func @transform_0(%arg0: i32) -> (i32, i32, i32) {
    %c0_i32 = arith.constant 0 : i32
    %c0_i32_0 = arith.constant 0 : i32
    %c0_i32_1 = arith.constant 0 : i32
    return %arg0, %c0_i32, %c0_i32_0 : i32, i32, i32
  }
  func.func @transform_1(%arg0: i32) -> (i32, i32, i32) {
    %c0_i32 = arith.constant 0 : i32
    %c0_i32_0 = arith.constant 0 : i32
    %c0_i32_1 = arith.constant 0 : i32
    %c0_i32_2 = arith.constant 0 : i32
    return %c0_i32, %c0_i32_0, %c0_i32_1 : i32, i32, i32
  }
  func.func @transform_2(%arg0: i32) -> (i32, i32) {
    %c0_i32 = arith.constant 0 : i32
    %c0_i32_0 = arith.constant 0 : i32
    %c0_i32_1 = arith.constant 0 : i32
    return %c0_i32, %c0_i32_0 : i32, i32
  }
  func.func @transform_3(%arg0: i32) -> (i32, i32, i32) {
    %c0_i32 = arith.constant 0 : i32
    %c0_i32_0 = arith.constant 0 : i32
    %c0_i32_1 = arith.constant 0 : i32
    %c0_i32_2 = arith.constant 0 : i32
    return %c0_i32, %c0_i32_0, %c0_i32_1 : i32, i32, i32
  }
  func.func @transform_4(%arg0: i32) -> (i32, i32) {
    %c0_i32 = arith.constant 0 : i32
    %c0_i32_0 = arith.constant 0 : i32
    %c0_i32_1 = arith.constant 0 : i32
    return %c0_i32, %c0_i32_0 : i32, i32
  }
  func.func @transform_5(%arg0: i32) -> (i32, i32, i32) {
    %c0_i32 = arith.constant 0 : i32
    %c0_i32_0 = arith.constant 0 : i32
    %c0_i32_1 = arith.constant 0 : i32
    %c0_i32_2 = arith.constant 0 : i32
    return %c0_i32, %c0_i32_0, %c0_i32_1 : i32, i32, i32
  }
  func.func @transform_6(%arg0: i32) -> (i32, i32) {
    %c0_i32 = arith.constant 0 : i32
    %c0_i32_0 = arith.constant 0 : i32
    %c0_i32_1 = arith.constant 0 : i32
    return %c0_i32, %c0_i32_0 : i32, i32
  }
  func.func @transform_7(%arg0: i32) -> (i32, i32) {
    %c0_i32 = arith.constant 0 : i32
    %c0_i32_0 = arith.constant 0 : i32
    %c0_i32_1 = arith.constant 0 : i32
    return %c0_i32, %c0_i32_0 : i32, i32
  }
  func.func @transform_8(%arg0: i32) -> (i32, i32) {
    %c0_i32 = arith.constant 0 : i32
    %c0_i32_0 = arith.constant 0 : i32
    %c0_i32_1 = arith.constant 0 : i32
    return %c0_i32, %c0_i32_0 : i32, i32
  }
  func.func @transform_9(%arg0: i32) -> (i32, i32, i32) {
    %c0_i32 = arith.constant 0 : i32
    %c0_i32_0 = arith.constant 0 : i32
    %c0_i32_1 = arith.constant 0 : i32
    return %arg0, %c0_i32, %c0_i32_0 : i32, i32, i32
  }
}

</mosaic_0001>

<bundles_post_ra>
// kernel: _rdb_forward_impl.1
= control target key start
LH: loop header
LB: loop body
LE: loop exit
PB: predicated region body
PF: predicated region fallthrough
CT: control target
= control target key end

     0   :  { %s1922_s30 = smov 0   ;;  %s2734_s0 = inlined_call_operand.vmem [shape: f32[2,4,256], index: 0, kind: input, shape index: {}]   ;;  %s2735_s1 = inlined_call_operand.vmem [shape: f32[3,8,24], index: 1, kind: input, shape index: {}]   ;;  %s2736_s2 = inlined_call_operand.vmem [shape: f32[8,1], index: 2, kind: input, shape index: {}]   ;;  %s2737_s3 = inlined_call_operand.vmem [shape: f32[3,8,48], index: 3, kind: input, shape index: {}]   ;;  %s2738_s4 = inlined_call_operand.vmem [shape: f32[8,1], index: 4, kind: input, shape index: {}]   ;;  %s2739_s5 = inlined_call_operand.vmem [shape: f32[3,8,72], index: 5, kind: input, shape index: {}]   ;;  %s2740_s6 = inlined_call_operand.vmem [shape: f32[8,1], index: 6, kind: input, shape index: {}]   ;;  %s2741_s7 = inlined_call_operand.vmem [shape: f32[4,32], index: 7, kind: input, shape index: {}]   ;;  %s2742_s8 = inlined_call_operand.vmem [shape: f32[4,1], index: 8, kind: input, shape index: {}]   ;;  %s2743_s9 = inlined_call_operand.vmem [shape: f32[2,4,256], index: 9, kind: output, shape index: {}]  }
   0x1 LB: > { %s1582_s10 = sadd.s32 4294967295, %s1860_s30   ;;  %p1586_p0 = scmp.ge.s32.totalorder %s1860_s30, 1  ;;  %s1860_s30 = sphi %s1922_s30, %s19_s30  }
   0x2   : > { %p287_p1 = scmp.lt.s32.totalorder %s1860_s30, 3 }
   0x4   : > { %p288_p2 = pnand %p1586_p0, %p287_p1 }
   0x5   : > { %p323_p3 = scmp.lt.s32.totalorder (!%p288_p2), %s1582_s10, 1  ;;  %s1863_s11 = smov (!%p288_p2), 15  }
   0x6   : > { %291 = sbr.rel (%p288_p2) target bundleno = 1063 (0x427), region = 56  ;;  %s1864_s12 = smov (!%p288_p2), 127  }
   0x7   : > { %s1865_s17 = smov (!%p288_p2), 17   ;;  %s1866_s18 = smov (!%p288_p2), 1  }
   0x8   : > { %s1867_s19 = smov (!%p288_p2), 16   ;;  %s1868_s20 = smov (!%p288_p2), 111  }
   0x9   : > { %s1869_s21 = smov (!%p288_p2), 112   ;;  %s1870_s22 = smov (!%p288_p2), 113  }
   0xb   : > { %v1862_v0 = vmov 0.0   ;;  %s2753_s10 = smov (!%p323_p3, %s1582_s10), 1  ;;  %v358_v9 = vlaneseq  ;;  %vm462_vm0 = vcmask 1039360   ;;  %vm422_vm2 = vcmask 121856   ;;  %v440_v36 = vld [vmem:[%s2735_s1] sm:$0xff]  ;;  %v1591_v44 = vld [vmem:[%s2735_s1 + $0x8] sm:$0xff] }
   0xc   : > { %416 = vrot.lane.b32.xlu0 %v1862_v0, %s1863_s11  ;;  %460 = vrot.lane.b32.xlu2 %v1862_v0, %s1864_s12  ;;  %334 = vst [vmem:[#allocation2] sm:$0xff] %v1862_v0  ;;  %s1691_s13 = sshll.u32 %s2753_s10, 3  ;;  %vm435_vm4 = vcmask 130048   ;;  %vm405_vm5 = vcmask 138240   ;;  %vm471_vm7 = vcmask 195584   ;;  %v642_v38 = vld [vmem:[%s2736_s2] sm:$0xff] }
   0xd   : > { %335 = vst [vmem:[#allocation2 + $0x58] sm:$0xff] %v1862_v0  ;;  %s1944_s16 = scalar_lea.vmem %s2734_s0, %s1691_s13  ;;  %v359_v10 = vand.u32 127, %v358_v9  ;;  %v1871_v39 = vmov 0   ;;  %vm447_vm8 = vcmask 7168   ;;  %vm577_vm10 = vcmask 908288   ;;  %v1604_v61 = vld [vmem:[%s2735_s1 + $0x10] sm:$0xff]  ;;  %s332_s27 = scalar_lea.vmem %s2743_s9, %s1691_s13 }
   0xe   : > { %v349_v1 = vld [vmem:[%s1944_s16] sm:$0xff]  ;;  %1721 = vset.pattern.permute.xlu1 %v1871_v39  ;;  %1782 = vset.pattern.permute.xlu2 %v1871_v39  ;;  %vm590_vm11 = vcmask 916480   ;;  %vm564_vm12 = vcmask 924672   ;;  %vm789_vm13 = vcmask 392192   ;;  %vm1204_vm14 = vcmask 588800  }
   0xf   : > { %351 = vst [vmem:[#allocation1] ss:$2 sm:$0xff] %v349_v1  ;;  %v360_v12 = vadd.s32 128, %v359_v10  ;;  %v365_v18 = vand.u32 15, %v359_v10  ;;  %1853 = vset.pattern.permute.xlu0 %v1871_v39  ;;  %vm1467_vm15 = vcmask 261120  }
  0x11   : > { %v372_v13 = vand.u32 15, %v360_v12  ;;  %vm2013_vm3 = vcmp.ne.s32.totalorder %v365_v18, 15  ;;  %vm2028_vm6 = vcmp.ne.s32.totalorder %v365_v18, 0 }
  0x13   : > { %vm2005_vm1 = vcmp.ne.s32.totalorder %v372_v13, 15  ;;  %vm2045_vm9 = vcmp.ne.s32.totalorder %v372_v13, 0 }
  0x14   : > { %399 = vrot.lane.b32.xlu2 %v1862_v0, %s1865_s17 }
  0x16   : > { %v353_v2 = vld.sshfl [vmem:[#allocation1 + $0x8] sm:$0xff pattern:$0x75316420]  ;;  %v352_v3 = vld.sshfl [vmem:[#allocation1] sm:$0xff pattern:$0x75316420] }
  0x17   : > { %357 = vst [vmem:[#allocation2 + $0x58] sm:$0xf] %v353_v2 }
  0x18   : > { %356 = vst [vmem:[#allocation2] sm:$0xf] %v352_v3 }
  0x1e   : > { %v1949_v4 = vld [vmem:[#allocation2 + $0x58] sm:$0xff] }
  0x1f   : > { %420 = vrot.lane.b32.xlu1 %v1949_v4, %s1863_s11  ;;  %v1953_v5 = vld [vmem:[#allocation2] sm:$0xff]  ;;  %458 = vrot.lane.b32.xlu2 %v1949_v4, %s1864_s12  ;;  %v1747_v58 = vpack.i.bf16 0.0, %v1949_v4 }
  0x20   : > { %418 = vrot.lane.b32.xlu0 %v1953_v5, %s1863_s11  ;;  %v1961_v6 = vpack.i.bf16 %v1953_v5, %v1862_v0  ;;  %v1977_v7 = vpack.i.bf16 %v1949_v4, %v1953_v5 }
  0x27   : > { %456 = vrot.lane.b32.xlu1 %v1953_v5, %s1864_s12  ;;  %441 = vrot.lane.b32.xlu2 %v1862_v0, %s1866_s18 }
  0x28   : > { %1712 = vrot.lane.b32.xlu0 %v1961_v6, %s1867_s19 }
  0x2f   : > { %433 = vrot.lane.b32.xlu1 %v1949_v4, %s1867_s19  ;;  %571 = vrot.lane.b32.xlu2 %v1953_v5, %s1868_s20 }
  0x30   : > { %401 = vrot.lane.b32.xlu0 %v1953_v5, %s1865_s17 }
  0x37   : > { %403 = vrot.lane.b32.xlu1 %v1949_v4, %s1865_s17  ;;  %1717 = vrot.lane.b32.xlu2 %v1977_v7, %s1869_s21 }
  0x38   : > { %443 = vrot.lane.b32.xlu0 %v1953_v5, %s1866_s18 }
  0x3f   : > { %445 = vrot.lane.b32.xlu1 %v1949_v4, %s1866_s18  ;;  %560 = vrot.lane.b32.xlu2 %v1949_v4, %s1870_s22 }
  0x40   : > { %573 = vrot.lane.b32.xlu0 %v1949_v4, %s1868_s20 }
  0x47   : > { %575 = vrot.lane.b32.xlu1 %v1862_v0, %s1868_s20  ;;  %763 = vrot.lane.b32.xlu2 %v1953_v5, %s1864_s12 }
  0x48   : > { %588 = vrot.lane.b32.xlu0 %v1862_v0, %s1869_s21 }
  0x4f   : > { %558 = vrot.lane.b32.xlu1 %v1953_v5, %s1870_s22  ;;  %739 = vrot.lane.b32.xlu2 %v1949_v4, %s1866_s18 }
  0x50   : > { %562 = vrot.lane.b32.xlu0 %v1862_v0, %s1870_s22 }
  0x57   : > { %645 = vperm.xlu1 %1721, %v642_v38   ;;  %1738 = vrot.lane.b32.xlu2 %v1862_v0, %s1863_s11 }
  0x58   : > { %765 = vrot.lane.b32.xlu0 %v1949_v4, %s1864_s12 }
  0x5f   : > { %1723 = vrot.lane.b32.xlu1 %v1862_v0, %s1864_s12  ;;  %694 = vrot.lane.b32.xlu2 %v1949_v4, %s1863_s11 }
  0x60   : > { %1733 = vrot.lane.b32.xlu0 %v1862_v0, %s1868_s20 }
  0x66   : > { %v461_v8 = vpop.permute.xlu2 %460 }
  0x67   : > { %1728 = vrot.lane.b32.xlu1 %v1862_v0, %s1866_s18  ;;  %1753 = vrot.lane.b32.xlu2 %v1862_v0, %s1870_s22 }
  0x68   : > { %900 = vrot.lane.b32.xlu0 %v1953_v5, %s1868_s20 }
  0x6e   : > { %v400_v11 = vpop.permute.xlu2 %399 }
  0x6f   : > { %737 = vrot.lane.b32.xlu1 %v1953_v5, %s1866_s18  ;;  %878 = vrot.lane.b32.xlu2 %v1949_v4, %s1870_s22 }
  0x70   : > { %1743 = vrot.lane.b32.xlu0 %v1961_v6, %s1869_s21 }
  0x77   : > { %902 = vrot.lane.b32.xlu1 %v1949_v4, %s1868_s20 }
  0x78   : > { %1748 = vrot.lane.b32.xlu0 %v1747_v58, %s1869_s21 }
  0x79   : > { %v459_v15 = vpop.permute.xlu2 %458 }
  0x7a   : > { %v464_v16 = vsel %vm462_vm0, %v459_v15, %v461_v8 }
  0x7b   : > { %1595 = vmatpush.msk.msra.mxu1 %vm2005_vm1, %v464_v16 }
  0x7d   : > { %509 = vmatpush.msra.mxu1 %v1949_v4 }
  0x7e   : > { %v417_v17 = vpop.permute.xlu0 %416 }
  0x7f   : > { %692 = vrot.lane.b32.xlu1 %v1953_v5, %s1863_s11 }
  0x80   : > { %1758 = vrot.lane.b32.xlu0 %v1977_v7, %s1867_s19 }
  0x81   : > { %v442_v24 = vpop.permute.xlu2 %441 }
  0x87   : > { %876 = vrot.lane.b32.xlu1 %v1953_v5, %s1870_s22 }
  0x88   : > { %1763 = vrot.lane.b32.xlu0 %v1862_v0, %s1865_s17 }
  0x89   : > { %v572_v35 = vpop.permute.xlu2 %571 }
  0x91   : > { %v421_v19 = vpop.permute.xlu1 %420  ;;  %v1718_v46 = vpop.permute.xlu2 %1717 }
  0x92   : > { %v419_v21 = vpop.permute.xlu0 %418  ;;  %v1720_v47 = vunpack.i.h.bf16 %v1718_v46  ;;  %v1719_v48 = vunpack.i.l.bf16 %v1718_v46 }
  0x93   : > { %v423_v22 = vsel %vm422_vm2, %v417_v17, %v419_v21  ;;  %v424_v23 = vsel %vm422_vm2, %v419_v21, %v421_v19 }
  0x94   : > { %1598 = vmatpush.msk.msra.mxu2 %vm2013_vm3, %v423_v22  ;;  %1601 = vmatpush.msk.msra.mxu3 %vm2005_vm1, %v424_v23  ;;  %v591_v53 = vsel %vm590_vm11, %v1719_v48, %v1720_v47 }
  0x99   : > { %v457_v25 = vpop.permute.xlu1 %456  ;;  %v561_v59 = vpop.permute.xlu2 %560 }
  0x9a   : > { %v1713_v26 = vpop.permute.xlu0 %1712  ;;  %v463_v27 = vsel %vm462_vm0, %v457_v25, %v459_v15 }
  0x9b   : > { %v1715_v28 = vunpack.i.h.bf16 %v1713_v26  ;;  %v1714_v29 = vunpack.i.l.bf16 %v1713_v26  ;;  %1592 = vmatpush.msk.msra.mxu0 %vm2013_vm3, %v463_v27  ;;  %v991_v27 = vld [vmem:[%s2738_s4] sm:$0xff] }
  0x9d   : > { %v436_v30 = vsel %vm435_vm4, %v1714_v29, %v1715_v28  ;;  %489 = vmatpush.msra.mxu0 %v1953_v5 }
  0x9e   : > { %532 = vmatpush.msra.mxu2 %v436_v30 }
  0xa1   : > { %v434_v31 = vpop.permute.xlu1 %433  ;;  %v2152_v25 = vpop.permute.xlu2 %763 }
  0xa2   : > { %v402_v33 = vpop.permute.xlu0 %401  ;;  %v437_v34 = vsel %vm435_vm4, %v1715_v28, %v434_v31 }
  0xa3   : > { %v406_v37 = vsel %vm405_vm5, %v400_v11, %v402_v33  ;;  %552 = vmatpush.msra.mxu3 %v437_v34 }
  0xa4   : > { %1599 = vmatpush.msk.msra.mxu2 %vm2028_vm6, %v406_v37 }
  0xa5   : > { %1600 = vmatmul.msk.f32.vlgmr.msra.gmra.mxu2 %vm471_vm7, %v440_v36 }
  0xa9   : > { %v404_v41 = vpop.permute.xlu1 %403  ;;  %v2165_v26 = vpop.permute.xlu2 %739 }
  0xaa   : > { %v444_v42 = vpop.permute.xlu0 %443  ;;  %v407_v43 = vsel %vm405_vm5, %v402_v33, %v404_v41 }
  0xab   : > { %v448_v45 = vsel %vm447_vm8, %v442_v24, %v444_v42  ;;  %1602 = vmatpush.msk.msra.mxu3 %vm2045_vm9, %v407_v43 }
  0xac   : > { %1593 = vmatpush.msk.msra.mxu0 %vm2028_vm6, %v448_v45  ;;  %1603 = vmatmul.msk.f32.vlgmr.msra.gmra.mxu3 %vm471_vm7, %v440_v36 }
  0xad   : > { %1594 = vmatmul.msk.f32.vlgmr.msra.gmra.mxu0 %vm471_vm7, %v1591_v44 }
  0xb1   : > { %v446_v49 = vpop.permute.xlu1 %445  ;;  %v2176_v29 = vpop.permute.xlu2 %1738 }
  0xb2   : > { %v574_v50 = vpop.permute.xlu0 %573  ;;  %v449_v51 = vsel %vm447_vm8, %v444_v42, %v446_v49 }
  0xb3   : > { %1596 = vmatpush.msk.msra.mxu1 %vm2045_vm9, %v449_v51  ;;  %v578_v52 = vsel %vm577_vm10, %v572_v35, %v574_v50 }
  0xb4   : > { %1605 = vmatpush.msk.msrb.mxu0 %vm2013_vm3, %v578_v52  ;;  %1597 = vmatmul.msk.f32.vlgmr.msra.gmra.mxu1 %vm471_vm7, %v1591_v44 }
  0xb6   : > { %614 = vmatpush.msrb.mxu0 %v591_v53 }
  0xb9   : > { %v576_v54 = vpop.permute.xlu1 %575  ;;  %v2186_v33 = vpop.permute.xlu2 %694 }
  0xba   : > { %v589_v55 = vpop.permute.xlu0 %588  ;;  %v579_v56 = vsel %vm577_vm10, %v574_v50, %v576_v54 }
  0xbb   : > { %1608 = vmatpush.msk.msrb.mxu1 %vm2005_vm1, %v579_v56  ;;  %v592_v57 = vsel %vm590_vm11, %v1720_v47, %v589_v55 }
  0xbd   : > { %634 = vmatpush.msrb.mxu1 %v592_v57 }
  0xc1   : > { %v559_v60 = vpop.permute.xlu1 %558  ;;  %v2198_v36 = vpop.permute.xlu2 %1753 }
  0xc2   : > { %v563_v62 = vpop.permute.xlu0 %562  ;;  %v565_v63 = vsel %vm564_vm12, %v559_v60, %v561_v59 }
  0xc3   : > { %1606 = vmatpush.msk.msrb.mxu0 %vm2028_vm6, %v565_v63  ;;  %v566_v1 = vsel %vm564_vm12, %v561_v59, %v563_v62 }
  0xc4   : > { %1609 = vmatpush.msk.msrb.mxu1 %vm2045_vm9, %v566_v1  ;;  %1607 = vmatmul.msk.f32.vlgmr.msrb.gmra.mxu0 %vm471_vm7, %v1604_v61 }
  0xc5   : > { %1610 = vmatmul.msk.f32.vlgmr.msrb.gmra.mxu1 %vm471_vm7, %v1604_v61 }
  0xc9   : > { %v646_v13 = vpop.permute.xlu1 %645  ;;  %v2212_v39 = vpop.permute.xlu2 %878 }
  0xca   : > { %v766_v28 = vpop.permute.xlu0 %765 }
  0xcb   : > { %v775_v56 = vsel %vm462_vm0, %v2152_v25, %v766_v28 }
  0xd1   : > { %v1724_v31 = vpop.permute.xlu1 %1723 }
  0xd2   : > { %v2184_v30 = vpop.permute.xlu0 %1733  ;;  %v1726_v49 = vunpack.i.h.bf16 %v1724_v31  ;;  %v1725_v50 = vunpack.i.l.bf16 %v1724_v31 }
  0xd3   : > { %v1736_v1 = vunpack.i.h.bf16 %v2184_v30 }
  0xd4   : > { %v776_v57 = vsel %vm462_vm0, %v766_v28, %v1726_v49 }
  0xd9   : > { %v2196_v35 = vpop.permute.xlu1 %1728 }
  0xda   : > { %v2194_v34 = vpop.permute.xlu0 %900  ;;  %v1731_v60 = vunpack.i.h.bf16 %v2196_v35  ;;  %v1730_v61 = vunpack.i.l.bf16 %v2196_v35 }
  0xe1   : > { %v738_v38 = vpop.permute.xlu1 %737 }
  0xe2   : > { %v2206_v37 = vpop.permute.xlu0 %1743 }
  0xe3   : > { %v1745_v25 = vunpack.i.l.bf16 %v2206_v37 }
  0xea   : > { %v2217_v41 = vpop.permute.xlu0 %1748 }
  0xf2   : > { %v2225_v43 = vpop.permute.xlu0 %1758 }
  0xfa   : > { %v2241_v46 = vpop.permute.xlu0 %1763 }
 0x128   : > { %v535_v8 = vpop.f32.mrf.mxu2 }
 0x12a   : > { %v492_v2 = vpop.f32.mrf.mxu0 }
 0x12b   : > { %v536_v10 = vadd.f32 %v535_v8, %v492_v2  ;;  %v1735_v2 = vunpack.i.l.bf16 %v2184_v30  ;;  %v748_v8 = vsel %vm447_vm8, %v738_v38, %v2165_v26  ;;  %v1751_v26 = vunpack.i.h.bf16 %v2217_v41 }
 0x12c   : > { %v1741_v30 = vunpack.i.h.bf16 %v2176_v29 }
 0x12f   : > { %v555_v9 = vpop.f32.mrf.mxu3 }
 0x131   : > { %v512_v3 = vpop.f32.mrf.mxu1 }
 0x132   : > { %v556_v11 = vadd.f32 %v555_v9, %v512_v3 }
 0x141   : > { %v617_v12 = vpop.f32.mrf.mxu0 }
 0x142   : > { %v640_v15 = vadd.f32 %v617_v12, %v536_v10  ;;  %v637_v16 = vpop.f32.mrf.mxu1  ;;  %v747_v12 = vsel %vm447_vm8, %v1731_v60, %v738_v38 }
 0x143   : > { %v641_v7 = vadd.f32 %v637_v16, %v556_v11 }
 0x144   : > { %v648_v17 = vadd.f32 %v646_v13, %v640_v15  ;;  %v1740_v15 = vunpack.i.l.bf16 %v2176_v29 }
 0x145   : > { %v649_v18 = vadd.f32 %v646_v13, %v641_v7 }
 0x146   : > { %v2115_v19 = vmax.f32 %v648_v17, 0.0  ;;  %v1611_v17 = vld [vmem:[%s2737_s3 + $0x8] sm:$0xff] }
 0x147   : > { %v2117_v21 = vmax.f32 %v649_v18, 0.0  ;;  %v1746_v18 = vunpack.i.h.bf16 %v2206_v37 }
 0x148   : > { %906 = vrot.lane.b32.xlu1 %v2115_v19, %s1868_s20  ;;  %769 = vrot.lane.b32.xlu2 %v2115_v19, %s1864_s12  ;;  %v2133_v22 = vpack.i.bf16 %v2115_v19, %v1862_v0 }
 0x149   : > { %771 = vrot.lane.b32.xlu0 %v2117_v21, %s1864_s12  ;;  %v2143_v23 = vpack.i.bf16 %v2117_v21, %v2115_v19  ;;  %v1777_v24 = vpack.i.bf16 0.0, %v2117_v21 }
 0x150   : > { %700 = vrot.lane.b32.xlu1 %v2117_v21, %s1863_s11  ;;  %743 = vrot.lane.b32.xlu2 %v2115_v19, %s1866_s18 }
 0x151   : > { %745 = vrot.lane.b32.xlu0 %v2117_v21, %s1866_s18 }
 0x158   : > { %1773 = vrot.lane.b32.xlu1 %v2133_v22, %s1867_s19  ;;  %908 = vrot.lane.b32.xlu2 %v2117_v21, %s1868_s20 }
 0x159   : > { %698 = vrot.lane.b32.xlu0 %v2115_v19, %s1863_s11 }
 0x160   : > { %884 = vrot.lane.b32.xlu1 %v2117_v21, %s1870_s22  ;;  %1768 = vrot.lane.b32.xlu2 %v2143_v23, %s1869_s21 }
 0x161   : > { %882 = vrot.lane.b32.xlu0 %v2115_v19, %s1870_s22 }
 0x168   : > { %674 = vrot.lane.b32.xlu1 %v2115_v19, %s1865_s17  ;;  %1778 = vrot.lane.b32.xlu2 %v1777_v24, %s1867_s19 }
 0x169   : > { %668 = vrot.lane.b32.xlu0 %v1953_v5, %s1865_s17 }
 0x170   : > { %670 = vrot.lane.b32.xlu1 %v1949_v4, %s1865_s17  ;;  %676 = vrot.lane.b32.xlu2 %v2117_v21, %s1865_s17 }
 0x171   : > { %1784 = vrot.lane.b32.xlu0 %v1862_v0, %s1864_s12 }
 0x178   : > { %1061 = vrot.lane.b32.xlu1 %v1949_v4, %s1863_s11  ;;  %994 = vperm.xlu2 %1782, %v991_v27   ;;  %v1750_v27 = vunpack.i.l.bf16 %v2217_v41 }
 0x179   : > { %1789 = vrot.lane.b32.xlu0 %v1862_v0, %s1863_s11 }
 0x180   : > { %1166 = vrot.lane.b32.xlu1 %v1953_v5, %s1864_s12  ;;  %1168 = vrot.lane.b32.xlu2 %v1949_v4, %s1864_s12 }
 0x181   : > { %1059 = vrot.lane.b32.xlu0 %v1953_v5, %s1863_s11 }
 0x188   : > { %1809 = vrot.lane.b32.xlu1 %v1862_v0, %s1865_s17  ;;  %1057 = vrot.lane.b32.xlu2 %v1862_v0, %s1863_s11 }
 0x189   : > { %1170 = vrot.lane.b32.xlu0 %v1862_v0, %s1864_s12 }
 0x190   : > { %1814 = vrot.lane.b32.xlu1 %v1862_v0, %s1866_s18  ;;  %1799 = vrot.lane.b32.xlu2 %v1862_v0, %s1868_s20 }
 0x191   : > { %1794 = vrot.lane.b32.xlu0 %v1961_v6, %s1867_s19  ;;  %v903_v6 = vpop.permute.xlu1 %902 }
 0x192   : > { %v912_v16 = vsel %vm577_vm10, %v2194_v34, %v903_v6  ;;  %v913_v7 = vsel %vm577_vm10, %v903_v6, %v1736_v1  ;;  %v936_v6 = vsel %vm590_vm11, %v1746_v18, %v1750_v27 }
 0x198   : > { %1023 = vrot.lane.b32.xlu1 %v1953_v5, %s1865_s17  ;;  %1093 = vrot.lane.b32.xlu2 %v1862_v0, %s1867_s19 }
 0x199   : > { %1804 = vrot.lane.b32.xlu0 %v1747_v58, %s1867_s19  ;;  %v2233_v44 = vpop.permute.xlu1 %692 }
 0x1a0   : > { %1128 = vrot.lane.b32.xlu1 %v1949_v4, %s1866_s18  ;;  %1329 = vrot.lane.b32.xlu2 %v1949_v4, %s1868_s20 }
 0x1a1   : > { %1331 = vrot.lane.b32.xlu0 %v1862_v0, %s1868_s20  ;;  %v2243_v47 = vpop.permute.xlu1 %876 }
 0x1a2   : > { %v770_v42 = vpop.permute.xlu2 %769 }
 0x1a8   : > { %1021 = vrot.lane.b32.xlu1 %v1862_v0, %s1865_s17  ;;  %1327 = vrot.lane.b32.xlu2 %v1953_v5, %s1868_s20 }
 0x1a9   : > { %1126 = vrot.lane.b32.xlu0 %v1953_v5, %s1866_s18 }
 0x1aa   : > { %v744_v45 = vpop.permute.xlu2 %743 }
 0x1ab   : > { %v749_v3 = vsel %vm447_vm8, %v1730_v61, %v744_v45  ;;  %v888_v61 = vsel %vm564_vm12, %v2243_v47, %v2212_v39 }
 0x1b0   : > { %1065 = vrot.lane.b32.xlu1 %v2115_v19, %s1863_s11  ;;  %1025 = vrot.lane.b32.xlu2 %v1949_v4, %s1865_s17 }
 0x1b1   : > { %1363 = vrot.lane.b32.xlu0 %v1953_v5, %s1869_s21 }
 0x1b2   : > { %v909_v48 = vpop.permute.xlu2 %908 }
 0x1b3   : > { %v915_v9 = vsel %vm577_vm10, %v909_v48, %v1735_v2 }
 0x1b8   : > { %1174 = vrot.lane.b32.xlu1 %v2117_v21, %s1864_s12  ;;  %1124 = vrot.lane.b32.xlu2 %v1862_v0, %s1866_s18 }
 0x1b9   : > { %1031 = vrot.lane.b32.xlu0 %v2117_v21, %s1865_s17 }
 0x1ba   : > { %v907_v51 = vpop.permute.xlu1 %906  ;;  %v1769_v52 = vpop.permute.xlu2 %1768 }
 0x1bb   : > { %v772_v53 = vpop.permute.xlu0 %771  ;;  %v1771_v10 = vunpack.i.h.bf16 %v1769_v52  ;;  %v1770_v11 = vunpack.i.l.bf16 %v1769_v52  ;;  %v914_v13 = vsel %vm577_vm10, %v907_v51, %v909_v48  ;;  %v703_v48 = vsel %vm422_vm2, %v2233_v44, %v2186_v33 }
 0x1bc   : > { %v777_v54 = vsel %vm462_vm0, %v770_v42, %v772_v53  ;;  %v778_v55 = vsel %vm462_vm0, %v772_v53, %v1725_v50  ;;  %v937_v42 = vsel %vm590_vm11, %v1750_v27, %v1751_v26  ;;  %v1761_v50 = vunpack.i.h.bf16 %v2225_v43 }
 0x1bd   : > { %1612 = vmatpush.msk.msrb.mxu2 %vm2013_vm3, %v777_v54  ;;  %1617 = vmatpush.msk.msrb.mxu3 %vm2005_vm1, %v778_v55  ;;  %v938_v34 = vsel %vm590_vm11, %v1770_v11, %v1771_v10  ;;  %v939_v38 = vsel %vm590_vm11, %v1771_v10, %v1745_v25  ;;  %v1760_v51 = vunpack.i.l.bf16 %v2225_v43  ;;  %v1756_v53 = vunpack.i.h.bf16 %v2198_v36 }
 0x1be   : > { %v1755_v33 = vunpack.i.l.bf16 %v2198_v36 }
 0x1bf   : > { %1613 = vmatpush.msk.msrb.mxu2 %vm2013_vm3, %v775_v56  ;;  %1618 = vmatpush.msk.msrb.mxu3 %vm2005_vm1, %v776_v57  ;;  %v889_v60 = vsel %vm564_vm12, %v2212_v39, %v1756_v53  ;;  %v1766_v39 = vunpack.i.h.bf16 %v2241_v46 }
 0x1c0   : > { %1172 = vrot.lane.b32.xlu1 %v2115_v19, %s1864_s12  ;;  %1819 = vrot.lane.b32.xlu2 %v1862_v0, %s1870_s22 }
 0x1c1   : > { %825 = vmatpush.msrb.mxu3 %v2117_v21  ;;  %1134 = vrot.lane.b32.xlu0 %v2117_v21, %s1866_s18 }
 0x1c2   : > { %805 = vmatpush.msrb.mxu2 %v2115_v19  ;;  %v701_v58 = vpop.permute.xlu1 %700  ;;  %v2272_v59 = vpop.permute.xlu2 %1778 }
 0x1c3   : > { %826 = vmatpush.msrb.mxu3 %v1949_v4  ;;  %v746_v62 = vpop.permute.xlu0 %745  ;;  %v1781_v49 = vunpack.i.h.bf16 %v2272_v59  ;;  %v1780_v52 = vunpack.i.l.bf16 %v2272_v59  ;;  %v727_v59 = vsel %vm435_vm4, %v1760_v51, %v1761_v50 }
 0x1c4   : > { %806 = vmatpush.msrb.mxu2 %v1953_v5  ;;  %v750_v63 = vsel %vm447_vm8, %v744_v45, %v746_v62  ;;  %v702_v45 = vsel %vm422_vm2, %v1741_v30, %v2233_v44  ;;  %v1765_v62 = vunpack.i.l.bf16 %v2241_v46 }
 0x1c5   : > { %1619 = vmatpush.msk.msrb.mxu3 %vm2045_vm9, %v750_v63  ;;  %v726_v36 = vsel %vm435_vm4, %v1781_v49, %v1760_v51 }
 0x1c6   : > { %1614 = vmatpush.msk.msrb.mxu2 %vm2028_vm6, %v749_v3 }
 0x1c7   : > { %1620 = vmatpush.msk.msrb.mxu3 %vm2045_vm9, %v748_v8  ;;  %v734_v8 = vld [vmem:[%s2737_s3] sm:$0xff] }
 0x1c8   : > { %1615 = vmatpush.msk.msrb.mxu2 %vm2028_vm6, %v747_v12  ;;  %1335 = vrot.lane.b32.xlu1 %v2117_v21, %s1868_s20 }
 0x1c9   : > { %1638 = vmatpush.msk.msra.mxu3 %vm2005_vm1, %v915_v9  ;;  %1834 = vrot.lane.b32.xlu0 %v2133_v22, %s1869_s21 }
 0x1ca   : > { %1633 = vmatpush.msk.msra.mxu2 %vm2013_vm3, %v914_v13  ;;  %1067 = vrot.lane.b32.xlu2 %v2117_v21, %s1863_s11  ;;  %v1774_v22 = vpop.permute.xlu1 %1773  ;;  %v2316_v28 = vpop.permute.xlu2 %676 }
 0x1cb   : > { %1639 = vmatpush.msk.msra.mxu3 %vm2005_vm1, %v913_v7  ;;  %v699_v31 = vpop.permute.xlu0 %698  ;;  %1616 = vmatmul.msk.f32.vlgmr.msrb.gmra.mxu2 %vm789_vm13, %v1611_v17  ;;  %v1776_v29 = vunpack.i.h.bf16 %v1774_v22  ;;  %v1775_v41 = vunpack.i.l.bf16 %v1774_v22 }
 0x1cc   : > { %1634 = vmatpush.msk.msra.mxu2 %vm2013_vm3, %v912_v16  ;;  %v704_v35 = vsel %vm422_vm2, %v1740_v15, %v699_v31  ;;  %v705_v37 = vsel %vm422_vm2, %v699_v31, %v701_v58  ;;  %1621 = vmatmul.msk.f32.vlgmr.msrb.gmra.mxu3 %vm789_vm13, %v1611_v17 }
 0x1cd   : > { %981 = vmatpush.msra.mxu3 %v939_v38  ;;  %1622 = vmatpush.msk.msra.mxu0 %vm2013_vm3, %v704_v35  ;;  %v728_v44 = vsel %vm435_vm4, %v1775_v41, %v1776_v29  ;;  %v729_v43 = vsel %vm435_vm4, %v1776_v29, %v1780_v52 }
 0x1ce   : > { %961 = vmatpush.msra.mxu2 %v938_v34  ;;  %1627 = vmatpush.msk.msra.mxu1 %vm2005_vm1, %v705_v37 }
 0x1cf   : > { %982 = vmatpush.msra.mxu3 %v937_v42  ;;  %1623 = vmatpush.msk.msra.mxu0 %vm2013_vm3, %v702_v45 }
 0x1d0   : > { %962 = vmatpush.msra.mxu2 %v936_v6  ;;  %1628 = vmatpush.msk.msra.mxu1 %vm2005_vm1, %v703_v48 }
 0x1d1   : > { %1333 = vrot.lane.b32.xlu1 %v2115_v19, %s1868_s20  ;;  %848 = vmatpush.msra.mxu0 %v728_v44 }
 0x1d2   : > { %v885_v54 = vpop.permute.xlu1 %884  ;;  %v2354_v55 = vpop.permute.xlu2 %994  ;;  %1824 = vrot.lane.b32.xlu2 %v2143_v23, %s1867_s19  ;;  %868 = vmatpush.msra.mxu1 %v729_v43  ;;  %v1632_v23 = vld [vmem:[%s2737_s3 + $0x10] sm:$0xff] }
 0x1d3   : > { %v883_v56 = vpop.permute.xlu0 %882  ;;  %v891_v57 = vsel %vm564_vm12, %v885_v54, %v1755_v33  ;;  %849 = vmatpush.msra.mxu0 %v726_v36 }
 0x1d4   : > { %v890_v58 = vsel %vm564_vm12, %v883_v56, %v885_v54  ;;  %1640 = vmatpush.msk.msra.mxu3 %vm2045_vm9, %v891_v57  ;;  %869 = vmatpush.msra.mxu1 %v727_v59 }
 0x1d5   : > { %1635 = vmatpush.msk.msra.mxu2 %vm2028_vm6, %v890_v58 }
 0x1d6   : > { %1641 = vmatpush.msk.msra.mxu3 %vm2045_vm9, %v889_v60 }
 0x1d7   : > { %1636 = vmatpush.msk.msra.mxu2 %vm2028_vm6, %v888_v61  ;;  %1642 = vmatmul.msk.f32.vlgmr.msra.gmra.mxu3 %vm789_vm13, %v1632_v23 }
 0x1d8   : > { %1637 = vmatmul.msk.f32.vlgmr.msra.gmra.mxu2 %vm789_vm13, %v1632_v23 }
 0x1d9   : > { %1299 = vrot.lane.b32.xlu1 %v2117_v21, %s1870_s22 }
 0x1da   : > { %v675_v63 = vpop.permute.xlu1 %674  ;;  %v2383_v1 = vpop.permute.xlu2 %1168  ;;  %1029 = vrot.lane.b32.xlu2 %v2115_v19, %s1865_s17 }
 0x1db   : > { %v669_v47 = vpop.permute.xlu0 %668  ;;  %v680_v2 = vsel %vm405_vm5, %v1765_v62, %v675_v63  ;;  %v681_v3 = vsel %vm405_vm5, %v675_v63, %v2316_v28 }
 0x1dc   : > { %1624 = vmatpush.msk.msra.mxu0 %vm2028_vm6, %v680_v2  ;;  %1629 = vmatpush.msk.msra.mxu1 %vm2045_vm9, %v681_v3  ;;  %v678_v46 = vsel %vm405_vm5, %v1766_v39, %v669_v47 }
 0x1de   : > { %1625 = vmatpush.msk.msra.mxu0 %vm2028_vm6, %v678_v46 }
 0x1df   : > { %1626 = vmatmul.msk.f32.vlgmr.msra.gmra.mxu0 %vm789_vm13, %v734_v8 }
 0x1e2   : > { %v671_v9 = vpop.permute.xlu1 %670  ;;  %v1058_v10 = vpop.permute.xlu2 %1057  ;;  %1132 = vrot.lane.b32.xlu2 %v2115_v19, %s1866_s18 }
 0x1e3   : > { %v2404_v11 = vpop.permute.xlu0 %1784  ;;  %v679_v12 = vsel %vm405_vm5, %v669_v47, %v671_v9  ;;  %v1461_v9 = vld [vmem:[%s2742_s8] sm:$0xf] }
 0x1e4   : > { %1630 = vmatpush.msk.msra.mxu1 %vm2045_vm9, %v679_v12  ;;  %v1440_v12 = vld [vmem:[%s2740_s6] sm:$0xff] }
 0x1e5   : > { %1631 = vmatmul.msk.f32.vlgmr.msra.gmra.mxu1 %vm789_vm13, %v734_v8 }
 0x1ea   : > { %v1062_v13 = vpop.permute.xlu1 %1061  ;;  %v2410_v15 = vpop.permute.xlu2 %1799  ;;  %1829 = vrot.lane.b32.xlu2 %v1777_v24, %s1869_s21 }
 0x1eb   : > { %v2415_v16 = vpop.permute.xlu0 %1789 }
 0x1f2   : > { %v1167_v7 = vpop.permute.xlu1 %1166  ;;  %v2417_v17 = vpop.permute.xlu2 %1093 }
 0x1f3   : > { %v1060_v18 = vpop.permute.xlu0 %1059  ;;  %v2421_v25 = vsel %vm462_vm0, %v1167_v7, %v2383_v1 }
 0x1f4   : > { %v2424_v26 = vsel %vm422_vm2, %v1058_v10, %v1060_v18  ;;  %v2427_v27 = vsel %vm422_vm2, %v1060_v18, %v1062_v13 }
 0x1fa   : > { %v2429_v22 = vpop.permute.xlu1 %1809  ;;  %v1330_v28 = vpop.permute.xlu2 %1329 }
 0x1fb   : > { %v2431_v24 = vpop.permute.xlu0 %1170 }
 0x202   : > { %v2433_v30 = vpop.permute.xlu1 %1814  ;;  %v1328_v31 = vpop.permute.xlu2 %1327 }
 0x203   : > { %v2435_v34 = vpop.permute.xlu0 %1794  ;;  %v2438_v35 = vsel %vm577_vm10, %v1328_v31, %v1330_v28 }
 0x204   : > { %v1797_v47 = vunpack.i.h.bf16 %v2435_v34 }
 0x20a   : > { %v1024_v37 = vpop.permute.xlu1 %1023  ;;  %v1026_v38 = vpop.permute.xlu2 %1025 }
 0x20b   : > { %v2440_v29 = vpop.permute.xlu0 %1804  ;;  %v2443_v41 = vsel %vm405_vm5, %v1024_v37, %v1026_v38 }
 0x212   : > { %v1129_v6 = vpop.permute.xlu1 %1128  ;;  %v1125_v49 = vpop.permute.xlu2 %1124 }
 0x213   : > { %v1332_v42 = vpop.permute.xlu0 %1331 }
 0x214   : > { %v2446_v45 = vsel %vm577_vm10, %v1330_v28, %v1332_v42 }
 0x21a   : > { %v1022_v48 = vpop.permute.xlu1 %1021  ;;  %v2497_v8 = vpop.permute.xlu2 %1819 }
 0x21b   : > { %v1127_v50 = vpop.permute.xlu0 %1126  ;;  %v2449_v51 = vsel %vm405_vm5, %v1022_v48, %v1024_v37  ;;  %v1787_v48 = vunpack.i.h.bf16 %v2404_v11  ;;  %v1821_v14 = vunpack.i.l.bf16 %v2497_v8 }
 0x21c   : > { %v2452_v52 = vsel %vm447_vm8, %v1125_v49, %v1127_v50  ;;  %v2455_v53 = vsel %vm447_vm8, %v1127_v50, %v1129_v6  ;;  %v1786_v49 = vunpack.i.l.bf16 %v2404_v11 }
 0x222   : > { %v1066_v7 = vpop.permute.xlu1 %1065 }
 0x224   : > { %v1068_v10 = vpop.permute.xlu2 %1067 }
 0x22a   : > { %v1175_v28 = vpop.permute.xlu1 %1174 }
 0x22c   : > { %v2518_v13 = vpop.permute.xlu2 %1824 }
 0x232   : > { %v1173_v37 = vpop.permute.xlu1 %1172 }
 0x234   : > { %v2520_v18 = vpop.permute.xlu2 %1029 }
 0x23a   : > { %v2530_v42 = vpop.permute.xlu1 %1335 }
 0x23c   : > { %v2524_v31 = vpop.permute.xlu2 %1132 }
 0x244   : > { %v2528_v6 = vpop.permute.xlu2 %1829 }
 0x245   : > { %v1832_v20 = vunpack.i.h.bf16 %v2528_v6 }
 0x24e   : > { %v810_v33 = vpop.f32.mrf.mxu2 }
 0x24f   : > { %v830_v44 = vpop.f32.mrf.mxu3 }
 0x25a   : > { %v986_v59 = vpop.f32.mrf.mxu3 }
 0x25b   : > { %v966_v54 = vpop.f32.mrf.mxu2 }
 0x25c   : > { %v853_v43 = vpop.f32.mrf.mxu0 }
 0x25d   : > { %v854_v56 = vadd.f32 %v853_v43, %v810_v33  ;;  %v1187_v43 = vsel %vm462_vm0, %v1175_v28, %v1787_v48 }
 0x25f   : > { %v989_v57 = vadd.f32 %v966_v54, %v854_v56  ;;  %v1185_v54 = vsel %vm462_vm0, %v2383_v1, %v2431_v24  ;;  %v2545_v56 = vpop.permute.xlu1 %1333  ;;  %v1792_v24 = vunpack.i.h.bf16 %v2415_v16 }
 0x261   : > { %v997_v36 = vadd.f32 %v2354_v55, %v989_v57 }
 0x262   : > { %v873_v58 = vpop.f32.mrf.mxu1 }
 0x263   : > { %v2458_v60 = vmax.f32 %v997_v36, 0.0  ;;  %v874_v23 = vadd.f32 %v873_v58, %v830_v44  ;;  %v1186_v58 = vsel %vm462_vm0, %v1173_v37, %v1175_v28  ;;  %v1812_v28 = vunpack.i.h.bf16 %v2429_v22 }
 0x264   : > { %v1811_v37 = vunpack.i.l.bf16 %v2429_v22 }
 0x265   : > { %v990_v61 = vadd.f32 %v986_v59, %v874_v23  ;;  %1071 = vrot.lane.b32.xlu0 %v2458_v60, %s1863_s11  ;;  %v1848_v46 = vpack.i.bf16 %v1949_v4, %v2458_v60  ;;  %v1791_v59 = vunpack.i.l.bf16 %v2415_v16  ;;  %v1041_v22 = vsel %vm405_vm5, %v1812_v28, %v2520_v18 }
 0x267   : > { %v998_v62 = vadd.f32 %v2354_v55, %v990_v61  ;;  %v1806_v55 = vunpack.i.l.bf16 %v2440_v29  ;;  %v2563_v1 = vpop.permute.xlu1 %1299 }
 0x269   : > { %v2463_v63 = vmax.f32 %v998_v62, 0.0  ;;  %v2489_v2 = vsel %vm435_vm4, %v1797_v47, %v1806_v55  ;;  %v1796_v62 = vunpack.i.l.bf16 %v2435_v34  ;;  %v1078_v55 = vsel %vm422_vm2, %v1066_v7, %v1068_v10 }
 0x26b   : > { %1180 = vrot.lane.b32.xlu2 %v2463_v63, %s1864_s12  ;;  %1073 = vrot.lane.b32.xlu1 %v2463_v63, %s1863_s11  ;;  %v1838_v39 = vpack.i.bf16 %v2463_v63, %v2458_v60  ;;  %v1843_v3 = vpack.i.bf16 0.0, %v2463_v63 }
 0x26d   : > { %1839 = vrot.lane.b32.xlu0 %v1838_v39, %s1867_s19  ;;  %v1807_v39 = vunpack.i.h.bf16 %v2440_v29 }
 0x273   : > { %1341 = vrot.lane.b32.xlu1 %v2463_v63, %s1868_s20  ;;  %1178 = vrot.lane.b32.xlu2 %v2458_v60, %s1864_s12 }
 0x275   : > { %1035 = vrot.lane.b32.xlu0 %v2458_v60, %s1865_s17 }
 0x27b   : > { %1037 = vrot.lane.b32.xlu1 %v2463_v63, %s1865_s17  ;;  %1339 = vrot.lane.b32.xlu2 %v2458_v60, %s1868_s20 }
 0x27d   : > { %1138 = vrot.lane.b32.xlu0 %v2458_v60, %s1866_s18 }
 0x283   : > { %1140 = vrot.lane.b32.xlu1 %v2463_v63, %s1866_s18  ;;  %1303 = vrot.lane.b32.xlu2 %v2458_v60, %s1870_s22 }
 0x285   : > { %1844 = vrot.lane.b32.xlu0 %v1843_v3, %s1869_s21  ;;  %v1826_v3 = vunpack.i.l.bf16 %v2518_v13 }
 0x287   : > { %v1113_v29 = vsel %vm435_vm4, %v1807_v39, %v1826_v3 }
 0x28b   : > { %1305 = vrot.lane.b32.xlu1 %v2463_v63, %s1870_s22  ;;  %1297 = vrot.lane.b32.xlu2 %v2115_v19, %s1870_s22 }
 0x28d   : > { %1849 = vrot.lane.b32.xlu0 %v1848_v46, %s1869_s21 }
 0x293   : > { %1295 = vrot.lane.b32.xlu1 %v1862_v0, %s1870_s22  ;;  %1464 = vperm.xlu2 %1782, %v1461_v9   ;;  %v2522_v0 = vpop.permute.xlu0 %1363 }
 0x295   : > { %1293 = vrot.lane.b32.xlu0 %v1949_v4, %s1870_s22 }
 0x29b   : > { %1443 = vperm.xlu1 %1721, %v1440_v12   ;;  %v2526_v38 = vpop.permute.xlu0 %1031 }
 0x29d   : > { %1291 = vrot.lane.b32.xlu0 %v1953_v5, %s1870_s22 }
 0x2a3   : > { %v2534_v50 = vpop.permute.xlu0 %1134 }
 0x2ab   : > { %v2551_v36 = vpop.permute.xlu0 %1834 }
 0x2ac   : > { %v1836_v39 = vunpack.i.l.bf16 %v2551_v36 }
 0x2c5   : > { %v1181_v33 = vpop.permute.xlu2 %1180 }
 0x2c6   : > { %v1189_v44 = vsel %vm462_vm0, %v1181_v33, %v1786_v49 }
 0x2c7   : > { %1651 = vmatpush.msk.msrb.mxu1 %vm2005_vm1, %v1189_v44 }
 0x2c9   : > { %1652 = vmatpush.msk.msrb.mxu1 %vm2005_vm1, %v1187_v43 }
 0x2cb   : > { %1653 = vmatpush.msk.msrb.mxu1 %vm2005_vm1, %v1185_v54 }
 0x2cd   : > { %1238 = vmatpush.msrb.mxu1 %v2463_v63  ;;  %v1179_v11 = vpop.permute.xlu2 %1178 }
 0x2ce   : > { %v1188_v57 = vsel %vm462_vm0, %v1179_v11, %v1181_v33  ;;  %vm1523_vm0 = vcmask 1043456  }
 0x2cf   : > { %1644 = vmatpush.msk.msrb.mxu0 %vm2013_vm3, %v1188_v57  ;;  %1239 = vmatpush.msrb.mxu1 %v2117_v21  ;;  %v1643_v57 = vld [vmem:[%s2739_s5 + $0x8] sm:$0xff] }
 0x2d1   : > { %1645 = vmatpush.msk.msrb.mxu0 %vm2013_vm3, %v1186_v58  ;;  %1240 = vmatpush.msrb.mxu1 %v1949_v4  ;;  %v1077_v4 = vsel %vm422_vm2, %v1792_v24, %v1066_v7  ;;  %v1802_v24 = vunpack.i.h.bf16 %v2410_v15 }
 0x2d3   : > { %1646 = vmatpush.msk.msrb.mxu0 %vm2013_vm3, %v2421_v25 }
 0x2d5   : > { %1218 = vmatpush.msrb.mxu0 %v2458_v60  ;;  %v1340_v54 = vpop.permute.xlu2 %1339 }
 0x2d7   : > { %1219 = vmatpush.msrb.mxu0 %v2115_v19  ;;  %v1072_v23 = vpop.permute.xlu0 %1071 }
 0x2d8   : > { %v1079_v61 = vsel %vm422_vm2, %v1791_v59, %v1072_v23  ;;  %v1801_v59 = vunpack.i.l.bf16 %v2410_v15 }
 0x2d9   : > { %1658 = vmatpush.msk.msrb.mxu2 %vm2013_vm3, %v1079_v61  ;;  %1220 = vmatpush.msrb.mxu0 %v1953_v5 }
 0x2db   : > { %1659 = vmatpush.msk.msrb.mxu2 %vm2013_vm3, %v1077_v4 }
 0x2dd   : > { %v1074_v25 = vpop.permute.xlu1 %1073  ;;  %1660 = vmatpush.msk.msrb.mxu2 %vm2013_vm3, %v2424_v26  ;;  %v1827_v26 = vunpack.i.h.bf16 %v2518_v13  ;;  %v1111_v13 = vsel %vm435_vm4, %v2417_v17, %v1797_v47  ;;  %v1123_v17 = vld [vmem:[%s2739_s5] sm:$0xff]  ;;  %v1817_v47 = vunpack.i.h.bf16 %v2433_v30  ;;  %v1304_v15 = vpop.permute.xlu2 %1303 }
 0x2de   : > { %v1080_v16 = vsel %vm422_vm2, %v1072_v23, %v1074_v25 }
 0x2df   : > { %1665 = vmatpush.msk.msrb.mxu3 %vm2005_vm1, %v1080_v16  ;;  %v1840_v5 = vpop.permute.xlu0 %1839  ;;  %v1114_v48 = vsel %vm435_vm4, %v1826_v3, %v1827_v26  ;;  %v1837_v16 = vunpack.i.h.bf16 %v2551_v36 }
 0x2e0   : > { %v1842_v46 = vunpack.i.h.bf16 %v1840_v5  ;;  %v1841_v9 = vunpack.i.l.bf16 %v1840_v5 }
 0x2e1   : > { %1666 = vmatpush.msk.msrb.mxu3 %vm2005_vm1, %v1078_v55  ;;  %v1822_v55 = vunpack.i.h.bf16 %v2497_v8 }
 0x2e2   : > { %v1115_v12 = vsel %vm435_vm4, %v1796_v62, %v1841_v9  ;;  %v1116_v10 = vsel %vm435_vm4, %v1841_v9, %v1842_v46 }
 0x2e3   : > { %1261 = vmatpush.msrb.mxu2 %v1115_v12  ;;  %1667 = vmatpush.msk.msrb.mxu3 %vm2005_vm1, %v2427_v27  ;;  %v1312_v8 = vsel %vm564_vm12, %v2563_v1, %v1822_v55 }
 0x2e5   : > { %v1342_v7 = vpop.permute.xlu1 %1341  ;;  %1262 = vmatpush.msrb.mxu2 %v1113_v29  ;;  %1281 = vmatpush.msrb.mxu3 %v1116_v10  ;;  %v1298_v46 = vpop.permute.xlu2 %1297  ;;  %v1672_v29 = vld [vmem:[%s2739_s5 + $0x10] sm:$0xff] }
 0x2e6   : > { %v1311_v12 = vsel %vm564_vm12, %v1298_v46, %v2563_v1 }
 0x2e7   : > { %v1036_v49 = vpop.permute.xlu0 %1035  ;;  %1263 = vmatpush.msrb.mxu2 %v1111_v13  ;;  %1282 = vmatpush.msrb.mxu3 %v1114_v48 }
 0x2e8   : > { %v1043_v27 = vsel %vm405_vm5, %v1811_v37, %v1036_v49 }
 0x2e9   : > { %1661 = vmatpush.msk.msrb.mxu2 %vm2028_vm6, %v1043_v27  ;;  %1283 = vmatpush.msrb.mxu3 %v2489_v2  ;;  %v1816_v2 = vunpack.i.l.bf16 %v2433_v30  ;;  %v1144_v30 = vsel %vm447_vm8, %v1817_v47, %v2524_v31 }
 0x2eb   : > { %1662 = vmatpush.msk.msrb.mxu2 %vm2028_vm6, %v1041_v22 }
 0x2ed   : > { %v1038_v34 = vpop.permute.xlu1 %1037  ;;  %1663 = vmatpush.msk.msrb.mxu2 %vm2028_vm6, %v2449_v51  ;;  %v1042_v51 = vsel %vm405_vm5, %v2520_v18, %v2526_v38  ;;  %v1349_v18 = vsel %vm577_vm10, %v1340_v54, %v1342_v7  ;;  %v1465_v54 = vpop.permute.xlu2 %1464 }
 0x2ee   : > { %v1044_v33 = vsel %vm405_vm5, %v1036_v49, %v1038_v34  ;;  %1664 = vmatmul.msk.f32.vlgmr.msrb.gmra.mxu2 %vm1204_vm14, %v1123_v17 }
 0x2ef   : > { %v1139_v44 = vpop.permute.xlu0 %1138  ;;  %1668 = vmatpush.msk.msrb.mxu3 %vm2045_vm9, %v1044_v33 }
 0x2f0   : > { %v1146_v43 = vsel %vm447_vm8, %v1816_v2, %v1139_v44 }
 0x2f1   : > { %1647 = vmatpush.msk.msrb.mxu0 %vm2028_vm6, %v1146_v43  ;;  %1669 = vmatpush.msk.msrb.mxu3 %vm2045_vm9, %v1042_v51  ;;  %v1453_v51 = vld [vmem:[#allocation2 + $0x58] sm:$0xff] }
 0x2f2   : > { %v1460_v43 = vld [vmem:[%s2741_s7] sm:$0xf] }
 0x2f3   : > { %1648 = vmatpush.msk.msrb.mxu0 %vm2028_vm6, %v1144_v30  ;;  %1670 = vmatpush.msk.msrb.mxu3 %vm2045_vm9, %v2443_v41  ;;  %v1347_v41 = vsel %vm577_vm10, %v2545_v56, %v2530_v42  ;;  %v1350_v56 = vsel %vm577_vm10, %v1342_v7, %v1801_v59  ;;  %v1452_v30 = vld [vmem:[#allocation2] sm:$0xff] }
 0x2f4   : > { %1671 = vmatmul.msk.f32.vlgmr.msrb.gmra.mxu3 %vm1204_vm14, %v1123_v17 }
 0x2f5   : > { %v1141_v38 = vpop.permute.xlu1 %1140  ;;  %1649 = vmatpush.msk.msrb.mxu0 %vm2028_vm6, %v2452_v52  ;;  %v1145_v52 = vsel %vm447_vm8, %v2524_v31, %v2534_v50  ;;  %v1348_v31 = vsel %vm577_vm10, %v2530_v42, %v1802_v24 }
 0x2f6   : > { %v1147_v11 = vsel %vm447_vm8, %v1139_v44, %v1141_v38  ;;  %1650 = vmatmul.msk.f32.vlgmr.msrb.gmra.mxu0 %vm1204_vm14, %v1643_v57 }
 0x2f7   : > { %1673 = vmatpush.msk.msra.mxu0 %vm2013_vm3, %v1349_v18  ;;  %1654 = vmatpush.msk.msrb.mxu1 %vm2045_vm9, %v1147_v11  ;;  %v1845_v58 = vpop.permute.xlu0 %1844 }
 0x2f8   : > { %v1847_v50 = vunpack.i.h.bf16 %v1845_v58  ;;  %v1846_v23 = vunpack.i.l.bf16 %v1845_v58 }
 0x2f9   : > { %1674 = vmatpush.msk.msra.mxu0 %vm2013_vm3, %v1347_v41  ;;  %1655 = vmatpush.msk.msrb.mxu1 %vm2045_vm9, %v1145_v52 }
 0x2fa   : > { %v1386_v25 = vsel %vm590_vm11, %v1846_v23, %v1847_v50 }
 0x2fb   : > { %1675 = vmatpush.msk.msra.mxu0 %vm2013_vm3, %v2438_v35  ;;  %1656 = vmatpush.msk.msrb.mxu1 %vm2045_vm9, %v2455_v53  ;;  %v1831_v35 = vunpack.i.l.bf16 %v2528_v6 }
 0x2fc   : > { %1657 = vmatmul.msk.f32.vlgmr.msrb.gmra.mxu1 %vm1204_vm14, %v1643_v57 }
 0x2fd   : > { %1680 = vmatpush.msk.msra.mxu1 %vm2005_vm1, %v1350_v56  ;;  %v1306_v53 = vpop.permute.xlu1 %1305  ;;  %v1384_v6 = vsel %vm590_vm11, %v1831_v35, %v1832_v20  ;;  %v1383_v5 = vsel %vm590_vm11, %v1837_v16, %v1831_v35 }
 0x2fe   : > { %v1314_v36 = vsel %vm564_vm12, %v1306_v53, %v1821_v14  ;;  %v1313_v26 = vsel %vm564_vm12, %v1304_v15, %v1306_v53 }
 0x2ff   : > { %1681 = vmatpush.msk.msra.mxu1 %vm2005_vm1, %v1348_v31  ;;  %v1850_v61 = vpop.permute.xlu0 %1849 }
 0x300   : > { %v1851_v4 = vunpack.i.l.bf16 %v1850_v61  ;;  %v1852_v42 = vunpack.i.h.bf16 %v1850_v61 }
 0x301   : > { %1682 = vmatpush.msk.msra.mxu1 %vm2005_vm1, %v2446_v45 }
 0x302   : > { %v1385_v62 = vsel %vm590_vm11, %v1851_v4, %v1846_v23  ;;  %v1382_v45 = vsel %vm590_vm11, %v1852_v42, %v1836_v39  ;;  %v1381_v3 = vsel %vm590_vm11, %v2522_v0, %v1852_v42 }
 0x303   : > { %1428 = vmatpush.msra.mxu1 %v1386_v25  ;;  %1408 = vmatpush.msra.mxu0 %v1385_v62 }
 0x305   : > { %1429 = vmatpush.msra.mxu1 %v1384_v6  ;;  %1409 = vmatpush.msra.mxu0 %v1383_v5  ;;  %v1296_v0 = vpop.permute.xlu1 %1295 }
 0x307   : > { %1430 = vmatpush.msra.mxu1 %v1382_v45  ;;  %v1294_v9 = vpop.permute.xlu0 %1293  ;;  %1410 = vmatpush.msra.mxu0 %v1381_v3 }
 0x308   : > { %v1310_v10 = vsel %vm564_vm12, %v1294_v9, %v1296_v0 }
 0x309   : > { %1683 = vmatpush.msk.msra.mxu1 %vm2045_vm9, %v1314_v36  ;;  %1676 = vmatpush.msk.msra.mxu0 %vm2028_vm6, %v1313_v26 }
 0x30b   : > { %1684 = vmatpush.msk.msra.mxu1 %vm2045_vm9, %v1312_v8  ;;  %1677 = vmatpush.msk.msra.mxu0 %vm2028_vm6, %v1311_v12 }
 0x30d   : > { %1685 = vmatpush.msk.msra.mxu1 %vm2045_vm9, %v1310_v10  ;;  %v1444_v34 = vpop.permute.xlu1 %1443 }
 0x30e   : > { %1686 = vmatmul.msk.f32.vlgmr.msra.gmra.mxu1 %vm1204_vm14, %v1672_v29 }
 0x30f   : > { %v1292_v7 = vpop.permute.xlu0 %1291 }
 0x310   : > { %v1309_v1 = vsel %vm564_vm12, %v1292_v7, %v1294_v9 }
 0x311   : > { %1678 = vmatpush.msk.msra.mxu0 %vm2028_vm6, %v1309_v1 }
 0x312   : > { %1679 = vmatmul.msk.f32.vlgmr.msra.gmra.mxu0 %vm1204_vm14, %v1672_v29 }
 0x371   : > { %v1268_v27 = vpop.f32.mrf.mxu2 }
 0x373   : > { %v1225_v37 = vpop.f32.mrf.mxu0 }
 0x374   : > { %v1269_v17 = vadd.f32 %v1268_v27, %v1225_v37 }
 0x377   : > { %v1288_v13 = vpop.f32.mrf.mxu3 }
 0x379   : > { %v1245_v28 = vpop.f32.mrf.mxu1 }
 0x37a   : > { %v1289_v48 = vadd.f32 %v1288_v13, %v1245_v28 }
 0x38b   : > { %v1435_v49 = vpop.f32.mrf.mxu1 }
 0x38c   : > { %v1439_v22 = vadd.f32 %v1435_v49, %v1289_v48 }
 0x38e   : > { %v1447_v40 = vadd.f32 %v1444_v34, %v1439_v22 }
 0x38f   : > { %v1415_v2 = vpop.f32.mrf.mxu0 }
 0x390   : > { %v1449_v47 = vmax.f32 %v1447_v40, 0.0  ;;  %v1438_v33 = vadd.f32 %v1415_v2, %v1269_v17 }
 0x392   : > { %1503 = vmatpush.msra.mxu3 %v1449_v47  ;;  %v1446_v44 = vadd.f32 %v1444_v34, %v1438_v33 }
 0x394   : > { %1504 = vmatpush.msra.mxu3 %v2463_v63  ;;  %v1448_v32 = vmax.f32 %v1446_v44, 0.0  ;;  %v1511_v63 = vld [vmem:[%s1944_s16] sm:$0xff] }
 0x395   : > { %1513 = vst [vmem:[#allocation1] ss:$2 sm:$0xff] %v1511_v63 }
 0x396   : > { %1505 = vmatpush.msra.mxu3 %v2117_v21  ;;  %1483 = vmatpush.msra.mxu2 %v1448_v32 }
 0x398   : > { %1506 = vmatpush.msra.mxu3 %v1453_v51  ;;  %1484 = vmatpush.msra.mxu2 %v2458_v60 }
 0x399   : > { %1688 = vmatmul.msk.f32.vlgmr.msra.gmra.mxu3 %vm1467_vm15, %v1460_v43 }
 0x39a   : > { %1485 = vmatpush.msra.mxu2 %v2115_v19 }
 0x39c   : > { %1486 = vmatpush.msra.mxu2 %v1452_v30  ;;  %v1515_v38 = vld.sshfl [vmem:[#allocation1 + $0x8] sm:$0xff pattern:$0x75316420]  ;;  %v1514_v41 = vld.sshfl [vmem:[#allocation1] sm:$0xff pattern:$0x75316420] }
 0x39d   : > { %1687 = vmatmul.msk.f32.vlgmr.msra.gmra.mxu2 %vm1467_vm15, %v1460_v43 }
 0x41c   : > { %v1508_v21 = vpop.f32.mrf.mxu3 }
 0x41d   : > { %v1509_v18 = vadd.f32 %v1508_v21, %v1465_v54 }
 0x41f   : > { %v1519_v11 = vadd.f32 %v1515_v38, %v1509_v18 }
 0x420   : > { %v1488_v57 = vpop.f32.mrf.mxu2 }
 0x421   : > { %v1489_v58 = vadd.f32 %v1488_v57, %v1465_v54  ;;  %v1522_v52 = vrot.slane %v1519_v11, 4 }
 0x423   : > { %v1518_v19 = vadd.f32 %v1514_v41, %v1489_v58 }
 0x425   : > { %v1524_v60 = vsel %vm1523_vm0, %v1518_v19, %v1522_v52 }
 0x426   : > { %1526 = vst [vmem:[%s332_s27] sm:$0xff] %v1524_v60 }
 0x427 PF: > { %s19_s30 = sadd.s32 1, %s1860_s30  }
 0x428   : > { %p16_p4 = scmp.ge.s32.totalorder %s19_s30, 4  }
 0x42a   :  { %18 = sbr.rel (!%p16_p4) target bundleno = 1 (0x1), region = 92 }

</bundles_post_ra>
